<compile_context>
chip_gen: v6e
topology: v6e:2x2x1
jax: 0.10.0
libtpu: 0.0.40
codegen_flags: <defaults>
</compile_context>

<pallas_src>
import functools

import jax
import jax.numpy as jnp
from jax.experimental import pallas as pl
from jax.experimental.pallas import tpu as pltpu

# ----- model hyperparameters (match the PyTorch module defaults) -----
VOCAB = 100
VOCAB_PAD = 128          # pad vocab to a full lane tile (one-hot contraction lane-dense)
NUM_CLASSES = 5
CLS_PAD = 128            # pad classifier output to 128 lanes (lane-dense final store)
D_MODEL = 64
NHEAD = 4
HEAD_DIM = D_MODEL // NHEAD
NUM_LAYERS = 2
FFN = 128
LN_EPS = 1e-5            # torch.nn.LayerNorm default

# Row layout of the packed "small vectors" matrix: 10 rows per layer + 1 classifier bias row.
_ROWS_PER_LAYER = 10
_ROW_BQ, _ROW_BK, _ROW_BV, _ROW_BO = 0, 1, 2, 3
_ROW_G1, _ROW_B1, _ROW_BF1, _ROW_BF2, _ROW_G2, _ROW_B2 = 4, 5, 6, 7, 8, 9
_ROW_BCLS = NUM_LAYERS * _ROWS_PER_LAYER


def _layer_norm(x, g, b):
    # PyTorch LayerNorm: biased variance, eps inside rsqrt.
    mean = jnp.mean(x, axis=-1, keepdims=True)
    var = jnp.mean((x - mean) ** 2, axis=-1, keepdims=True)
    inv = jax.lax.rsqrt(var + LN_EPS)
    return (x - mean) * inv * g + b


def _encoder_layer(x, B, S, l, wqkv_ref, wo_ref, w1_ref, w2_ref, small_ref, head_masks):
    """One post-norm TransformerEncoderLayer on x:(B*S, D), rows ordered (b, s)."""
    D = D_MODEL
    base = l * _ROWS_PER_LAYER

    def srow(i, w=D):
        # Static (1, w) view into the packed small-vector matrix.
        return small_ref[base + i:base + i + 1, 0:w]

    # --- Q/K/V projections: weights indexed off the stacked ref at their use sites ---
    # NOTE: casting matmul operands to bf16 (keeping preferred_element_type=f32) is the
    # v5e/v6e/v7x MXU lever once B*S grows; kept f32 here for exact torch parity.
    q = jnp.dot(x, wqkv_ref[l, 0, :, :], preferred_element_type=jnp.float32) + srow(_ROW_BQ)
    k = jnp.dot(x, wqkv_ref[l, 1, :, :], preferred_element_type=jnp.float32) + srow(_ROW_BK)
    v = jnp.dot(x, wqkv_ref[l, 2, :, :], preferred_element_type=jnp.float32) + srow(_ROW_BV)

    q3 = q.reshape(B, S, D)
    k3 = k.reshape(B, S, D)
    v3 = v.reshape(B, S, D)

    # --- multi-head attention without any 16-lane slices / minor-dim concats ---
    # Head h is selected by multiplying with a per-head feature mask (VPU) and contracting
    # the full 64-wide feature axis on the MXU: (q*m_h)·k == per-head scores, and
    # p_h·(v*m_h) puts head h's context into its own output columns, so summing the head
    # contributions reproduces torch's head-concat layout.
    scale = 1.0 / (HEAD_DIM ** 0.5)
    qm = jnp.concatenate([q3 * head_masks[h] for h in range(NHEAD)], axis=0)   # (NH*B,S,D)
    kk = jnp.concatenate([k3] * NHEAD, axis=0)                                 # (NH*B,S,D)
    vm = jnp.concatenate([v3 * head_masks[h] for h in range(NHEAD)], axis=0)   # (NH*B,S,D)

    s = jnp.einsum('bqd,bkd->bqk', qm, kk,
                   preferred_element_type=jnp.float32) * scale                 # (NH*B,S,S)

    # Softmax over keys on a flattened 2D view (plain lane reductions), exact divide.
    s2 = s.reshape(NHEAD * B * S, S)
    s2 = s2 - jnp.max(s2, axis=-1, keepdims=True)
    p2 = jnp.exp(s2)
    p2 = p2 / jnp.sum(p2, axis=-1, keepdims=True)
    p = p2.reshape(NHEAD * B, S, S)

    ctx_h = jnp.einsum('bqk,bkd->bqd', p, vm,
                       preferred_element_type=jnp.float32)                     # (NH*B,S,D)
    ctx = ctx_h[0:B]
    for h in range(1, NHEAD):
        ctx = ctx + ctx_h[h * B:(h + 1) * B]                                   # (B,S,D)
    ctx = ctx.reshape(B * S, D)

    # --- output projection + residual + LayerNorm1 ---
    attn_out = (jnp.dot(ctx, wo_ref[l, :, :], preferred_element_type=jnp.float32)
                + srow(_ROW_BO))
    x1 = _layer_norm(x + attn_out, srow(_ROW_G1), srow(_ROW_B1))

    # --- feed-forward (relu) + residual + LayerNorm2 ---
    hdn = jnp.maximum(
        jnp.dot(x1, w1_ref[l, :, :], preferred_element_type=jnp.float32)
        + srow(_ROW_BF1, FFN), 0.0)
    ff = jnp.dot(hdn, w2_ref[l, :, :], preferred_element_type=jnp.float32) + srow(_ROW_BF2)
    return _layer_norm(x1 + ff, srow(_ROW_G2), srow(_ROW_B2))


def fused_forward_kernel(B, S, tok_ref, emb_ref, wqkv_ref, wo_ref, w1_ref, w2_ref,
                         small_ref, wcls_ref, o_ref):
    """Entire forward pass: embed -> NUM_LAYERS encoder layers -> token 0 -> classifier."""
    BS = B * S

    # Embedding gather as a one-hot MXU matmul over the lane-dense padded vocab.
    tok = tok_ref[...]                                                     # (BS, 1) int32
    iota = jax.lax.broadcasted_iota(jnp.int32, (BS, VOCAB_PAD), 1)
    onehot = (iota == tok).astype(jnp.float32)                             # (BS, VOCAB_PAD)
    x = jnp.dot(onehot, emb_ref[...], preferred_element_type=jnp.float32)  # (BS, D)

    # Per-head feature masks, built once and reused by both layers.
    d_iota = jax.lax.broadcasted_iota(jnp.int32, (1, 1, D_MODEL), 2)
    head_masks = [((d_iota >= h * HEAD_DIM) & (d_iota < (h + 1) * HEAD_DIM))
                  .astype(jnp.float32) for h in range(NHEAD)]

    # Transformer encoder stack: activations never leave VMEM between layers.
    for l in range(NUM_LAYERS):
        x = _encoder_layer(x, B, S, l, wqkv_ref, wo_ref, w1_ref, w2_ref,
                           small_ref, head_masks)

    # Token 0 of each batch (== encoded[0] in torch's (S,B,D) layout) + classifier.
    cls = x.reshape(B, S, D_MODEL)[:, 0, :]                                # (B, D)
    b_cls = small_ref[_ROW_BCLS:_ROW_BCLS + 1, :]                          # (1, CLS_PAD)
    o_ref[...] = (jnp.dot(cls, wcls_ref[...], preferred_element_type=jnp.float32)
                  + b_cls)                                                 # (B, CLS_PAD)


_VMEM_SPEC = pl.BlockSpec(memory_space=pltpu.MemorySpace.VMEM)


def transformer_classifier_forward(tokens, params):
    B, S = tokens.shape
    tok2d = tokens.reshape(B * S, 1).astype(jnp.int32)
    args = (tok2d, params["emb"], params["wqkv"], params["wo"], params["w1"],
            params["w2"], params["small"], params["wcls"])
    out = pl.pallas_call(
        functools.partial(fused_forward_kernel, B, S),
        out_shape=jax.ShapeDtypeStruct((B, CLS_PAD), jnp.float32),
        in_specs=[_VMEM_SPEC] * len(args),
        out_specs=_VMEM_SPEC,
    )(*args)
    return out[:, :NUM_CLASSES]


def _pad_row(v, width=CLS_PAD):
    v = jnp.asarray(v, jnp.float32).reshape(1, -1)
    return jnp.pad(v, ((0, 0), (0, width - v.shape[1])))


def init_params(key):
    def nrm(k, shape, scale=0.02):
        return scale * jax.random.normal(k, shape, dtype=jnp.float32)

    keys = jax.random.split(key, NUM_LAYERS + 2)

    # Embedding table, vocab padded 100 -> 128 (padded rows are never selected).
    emb = nrm(keys[0], (VOCAB, D_MODEL), 1.0 / (D_MODEL ** 0.5))
    emb_pad = jnp.pad(emb, ((0, VOCAB_PAD - VOCAB), (0, 0)))

    wqkv, wo, w1, w2, rows = [], [], [], [], []
    for i in range(NUM_LAYERS):
        lk = jax.random.split(keys[1 + i], 8)
        # NOTE: weights stored as (in, out); transpose torch's (out, in) if loading real ones.
        wq = nrm(lk[0], (D_MODEL, D_MODEL))
        wk = nrm(lk[1], (D_MODEL, D_MODEL))
        wv = nrm(lk[2], (D_MODEL, D_MODEL))
        wqkv.append(jnp.stack([wq, wk, wv], axis=0))                        # (3, D, D)
        wo.append(nrm(lk[3], (D_MODEL, D_MODEL)))
        w1.append(nrm(lk[4], (D_MODEL, FFN)))
        w2.append(nrm(lk[5], (FFN, D_MODEL)))
        bqkv = nrm(lk[6], (3 * D_MODEL,), 0.01)
        bo = nrm(lk[7], (D_MODEL,), 0.01)
        bf1 = nrm(jax.random.fold_in(lk[7], 1), (FFN,), 0.01)
        bf2 = nrm(jax.random.fold_in(lk[7], 2), (D_MODEL,), 0.01)
        rows += [_pad_row(bqkv[0:D_MODEL]),                 # bq
                 _pad_row(bqkv[D_MODEL:2 * D_MODEL]),       # bk
                 _pad_row(bqkv[2 * D_MODEL:]),              # bv
                 _pad_row(bo),                              # bo
                 _pad_row(jnp.ones((D_MODEL,))),            # g1
                 _pad_row(jnp.zeros((D_MODEL,))),           # b1
                 _pad_row(bf1),                             # bf1 (128-wide)
                 _pad_row(bf2),                             # bf2
                 _pad_row(jnp.ones((D_MODEL,))),            # g2
                 _pad_row(jnp.zeros((D_MODEL,)))]           # b2

    wcls = nrm(keys[-1], (D_MODEL, NUM_CLASSES))
    wcls_pad = jnp.pad(wcls, ((0, 0), (0, CLS_PAD - NUM_CLASSES)))
    rows.append(_pad_row(jnp.zeros((NUM_CLASSES,))))        # classifier bias (row 20)

    return dict(
        emb=emb_pad,                          # (128, 64)
        wqkv=jnp.stack(wqkv, axis=0),         # (L, 3, 64, 64)
        wo=jnp.stack(wo, axis=0),             # (L, 64, 64)
        w1=jnp.stack(w1, axis=0),             # (L, 64, 128)
        w2=jnp.stack(w2, axis=0),             # (L, 128, 64)
        small=jnp.concatenate(rows, axis=0),  # (L*10 + 1, 128)
        wcls=wcls_pad,                        # (64, 128)
    )


@jax.jit
def forward(tokens, params):
    # Single fused Pallas kernel for the whole model.
    return transformer_classifier_forward(tokens, params)


if __name__ == "__main__":
    key = jax.random.PRNGKey(0)
    k_params, k_tokens = jax.random.split(key)
    params = init_params(k_params)

    B, S = 2, 8
    tokens = jax.random.randint(k_tokens, (B, S), 0, VOCAB, dtype=jnp.int32)

    logits = forward(tokens, params)
    jax.block_until_ready(logits)
    assert logits.shape == (B, NUM_CLASSES) and logits.dtype == jnp.float32
    print("KERNEL_OK")
</pallas_src>

<mosaic_0001>
module attributes {stable_mosaic.version = 11 : i64} {
  func.func @fused_forward_kernel(%arg0: memref<16x1xi32, #tpu.memory_space<vmem>>, %arg1: memref<128x64xf32, #tpu.memory_space<vmem>>, %arg2: memref<2x3x64x64xf32, #tpu.memory_space<vmem>>, %arg3: memref<2x64x64xf32, #tpu.memory_space<vmem>>, %arg4: memref<2x64x128xf32, #tpu.memory_space<vmem>>, %arg5: memref<2x128x64xf32, #tpu.memory_space<vmem>>, %arg6: memref<21x128xf32, #tpu.memory_space<vmem>>, %arg7: memref<64x128xf32, #tpu.memory_space<vmem>>, %arg8: memref<2x128xf32, #tpu.memory_space<vmem>>) attributes {dimension_semantics = [], scalar_prefetch = 0 : i64, scratch_operands = 0 : i64, tpu.core_type = #tpu.core_type<tc>} {
    %c0 = arith.constant 0 : index
    %c0_0 = arith.constant 0 : index
    %0 = vector.load %arg0[%c0, %c0_0] : memref<16x1xi32, #tpu.memory_space<vmem>>, vector<16x1xi32>
    %1 = tpu.iota {dimensions = array<i32: 1>} : vector<16x128xi32>
    %2 = vector.broadcast %0 : vector<16x1xi32> to vector<16x128xi32>
    %3 = arith.cmpi eq, %1, %2 : vector<16x128xi32>
    %4 = arith.extui %3 : vector<16x128xi1> to vector<16x128xi32>
    %5 = arith.sitofp %4 : vector<16x128xi32> to vector<16x128xf32>
    %c0_1 = arith.constant 0 : index
    %c0_2 = arith.constant 0 : index
    %6 = vector.load %arg1[%c0_1, %c0_2] : memref<128x64xf32, #tpu.memory_space<vmem>>, vector<128x64xf32>
    %cst = arith.constant dense<0.000000e+00> : vector<16x64xf32>
    %7 = tpu.matmul %5, %6, %cst {dimension_numbers = #tpu.dot_dimension_numbers<[1], [0], [0], [1], [0, 0, 1, 1], [], []>} : vector<16x128xf32>, vector<128x64xf32>, vector<16x64xf32> -> vector<16x64xf32>
    %8 = tpu.iota {dimensions = array<i32: 2>} : vector<1x1x64xi32>
    %c0_i32 = arith.constant 0 : i32
    %9 = vector.broadcast %c0_i32 : i32 to vector<1x1x64xi32>
    %10 = arith.cmpi sge, %8, %9 : vector<1x1x64xi32>
    %c16_i32 = arith.constant 16 : i32
    %11 = vector.broadcast %c16_i32 : i32 to vector<1x1x64xi32>
    %12 = arith.cmpi slt, %8, %11 : vector<1x1x64xi32>
    %13 = arith.andi %10, %12 : vector<1x1x64xi1>
    %14 = arith.extui %13 : vector<1x1x64xi1> to vector<1x1x64xi32>
    %15 = arith.sitofp %14 : vector<1x1x64xi32> to vector<1x1x64xf32>
    %c16_i32_3 = arith.constant 16 : i32
    %16 = vector.broadcast %c16_i32_3 : i32 to vector<1x1x64xi32>
    %17 = arith.cmpi sge, %8, %16 : vector<1x1x64xi32>
    %c32_i32 = arith.constant 32 : i32
    %18 = vector.broadcast %c32_i32 : i32 to vector<1x1x64xi32>
    %19 = arith.cmpi slt, %8, %18 : vector<1x1x64xi32>
    %20 = arith.andi %17, %19 : vector<1x1x64xi1>
    %21 = arith.extui %20 : vector<1x1x64xi1> to vector<1x1x64xi32>
    %22 = arith.sitofp %21 : vector<1x1x64xi32> to vector<1x1x64xf32>
    %c32_i32_4 = arith.constant 32 : i32
    %23 = vector.broadcast %c32_i32_4 : i32 to vector<1x1x64xi32>
    %24 = arith.cmpi sge, %8, %23 : vector<1x1x64xi32>
    %c48_i32 = arith.constant 48 : i32
    %25 = vector.broadcast %c48_i32 : i32 to vector<1x1x64xi32>
    %26 = arith.cmpi slt, %8, %25 : vector<1x1x64xi32>
    %27 = arith.andi %24, %26 : vector<1x1x64xi1>
    %28 = arith.extui %27 : vector<1x1x64xi1> to vector<1x1x64xi32>
    %29 = arith.sitofp %28 : vector<1x1x64xi32> to vector<1x1x64xf32>
    %c48_i32_5 = arith.constant 48 : i32
    %30 = vector.broadcast %c48_i32_5 : i32 to vector<1x1x64xi32>
    %31 = arith.cmpi sge, %8, %30 : vector<1x1x64xi32>
    %c64_i32 = arith.constant 64 : i32
    %32 = vector.broadcast %c64_i32 : i32 to vector<1x1x64xi32>
    %33 = arith.cmpi slt, %8, %32 : vector<1x1x64xi32>
    %34 = arith.andi %31, %33 : vector<1x1x64xi1>
    %35 = arith.extui %34 : vector<1x1x64xi1> to vector<1x1x64xi32>
    %36 = arith.sitofp %35 : vector<1x1x64xi32> to vector<1x1x64xf32>
    %c0_6 = arith.constant 0 : index
    %c0_7 = arith.constant 0 : index
    %c0_8 = arith.constant 0 : index
    %c0_9 = arith.constant 0 : index
    %37 = vector.load %arg2[%c0_6, %c0_7, %c0_8, %c0_9] : memref<2x3x64x64xf32, #tpu.memory_space<vmem>>, vector<1x1x64x64xf32>
    %38 = vector.shape_cast %37 : vector<1x1x64x64xf32> to vector<64x64xf32>
    %cst_10 = arith.constant dense<0.000000e+00> : vector<16x64xf32>
    %39 = tpu.matmul %7, %38, %cst_10 {dimension_numbers = #tpu.dot_dimension_numbers<[1], [0], [0], [1], [0, 0, 1, 1], [], []>} : vector<16x64xf32>, vector<64x64xf32>, vector<16x64xf32> -> vector<16x64xf32>
    %c0_11 = arith.constant 0 : index
    %c0_12 = arith.constant 0 : index
    %40 = vector.load %arg6[%c0_11, %c0_12] : memref<21x128xf32, #tpu.memory_space<vmem>>, vector<1x64xf32>
    %41 = vector.broadcast %40 : vector<1x64xf32> to vector<16x64xf32>
    %42 = arith.addf %39, %41 : vector<16x64xf32>
    %c0_13 = arith.constant 0 : index
    %c1 = arith.constant 1 : index
    %c0_14 = arith.constant 0 : index
    %c0_15 = arith.constant 0 : index
    %43 = vector.load %arg2[%c0_13, %c1, %c0_14, %c0_15] : memref<2x3x64x64xf32, #tpu.memory_space<vmem>>, vector<1x1x64x64xf32>
    %44 = vector.shape_cast %43 : vector<1x1x64x64xf32> to vector<64x64xf32>
    %cst_16 = arith.constant dense<0.000000e+00> : vector<16x64xf32>
    %45 = tpu.matmul %7, %44, %cst_16 {dimension_numbers = #tpu.dot_dimension_numbers<[1], [0], [0], [1], [0, 0, 1, 1], [], []>} : vector<16x64xf32>, vector<64x64xf32>, vector<16x64xf32> -> vector<16x64xf32>
    %c1_17 = arith.constant 1 : index
    %c0_18 = arith.constant 0 : index
    %46 = vector.load %arg6[%c1_17, %c0_18] : memref<21x128xf32, #tpu.memory_space<vmem>>, vector<1x64xf32>
    %47 = vector.broadcast %46 : vector<1x64xf32> to vector<16x64xf32>
    %48 = arith.addf %45, %47 : vector<16x64xf32>
    %c0_19 = arith.constant 0 : index
    %c2 = arith.constant 2 : index
    %c0_20 = arith.constant 0 : index
    %c0_21 = arith.constant 0 : index
    %49 = vector.load %arg2[%c0_19, %c2, %c0_20, %c0_21] : memref<2x3x64x64xf32, #tpu.memory_space<vmem>>, vector<1x1x64x64xf32>
    %50 = vector.shape_cast %49 : vector<1x1x64x64xf32> to vector<64x64xf32>
    %cst_22 = arith.constant dense<0.000000e+00> : vector<16x64xf32>
    %51 = tpu.matmul %7, %50, %cst_22 {dimension_numbers = #tpu.dot_dimension_numbers<[1], [0], [0], [1], [0, 0, 1, 1], [], []>} : vector<16x64xf32>, vector<64x64xf32>, vector<16x64xf32> -> vector<16x64xf32>
    %c2_23 = arith.constant 2 : index
    %c0_24 = arith.constant 0 : index
    %52 = vector.load %arg6[%c2_23, %c0_24] : memref<21x128xf32, #tpu.memory_space<vmem>>, vector<1x64xf32>
    %53 = vector.broadcast %52 : vector<1x64xf32> to vector<16x64xf32>
    %54 = arith.addf %51, %53 : vector<16x64xf32>
    %55 = vector.shape_cast %42 : vector<16x64xf32> to vector<2x8x64xf32>
    %56 = vector.shape_cast %48 : vector<16x64xf32> to vector<2x8x64xf32>
    %57 = vector.shape_cast %54 : vector<16x64xf32> to vector<2x8x64xf32>
    %58 = vector.broadcast %15 : vector<1x1x64xf32> to vector<2x8x64xf32>
    %59 = arith.mulf %55, %58 : vector<2x8x64xf32>
    %60 = vector.broadcast %22 : vector<1x1x64xf32> to vector<2x8x64xf32>
    %61 = arith.mulf %55, %60 : vector<2x8x64xf32>
    %62 = vector.broadcast %29 : vector<1x1x64xf32> to vector<2x8x64xf32>
    %63 = arith.mulf %55, %62 : vector<2x8x64xf32>
    %64 = vector.broadcast %36 : vector<1x1x64xf32> to vector<2x8x64xf32>
    %65 = arith.mulf %55, %64 : vector<2x8x64xf32>
    %66 = tpu.concatenate %59, %61, %63, %65 in 0 : vector<2x8x64xf32>, vector<2x8x64xf32>, vector<2x8x64xf32>, vector<2x8x64xf32> -> vector<8x8x64xf32>
    %67 = tpu.concatenate %56, %56, %56, %56 in 0 : vector<2x8x64xf32>, vector<2x8x64xf32>, vector<2x8x64xf32>, vector<2x8x64xf32> -> vector<8x8x64xf32>
    %68 = vector.broadcast %15 : vector<1x1x64xf32> to vector<2x8x64xf32>
    %69 = arith.mulf %57, %68 : vector<2x8x64xf32>
    %70 = vector.broadcast %22 : vector<1x1x64xf32> to vector<2x8x64xf32>
    %71 = arith.mulf %57, %70 : vector<2x8x64xf32>
    %72 = vector.broadcast %29 : vector<1x1x64xf32> to vector<2x8x64xf32>
    %73 = arith.mulf %57, %72 : vector<2x8x64xf32>
    %74 = vector.broadcast %36 : vector<1x1x64xf32> to vector<2x8x64xf32>
    %75 = arith.mulf %57, %74 : vector<2x8x64xf32>
    %76 = tpu.concatenate %69, %71, %73, %75 in 0 : vector<2x8x64xf32>, vector<2x8x64xf32>, vector<2x8x64xf32>, vector<2x8x64xf32> -> vector<8x8x64xf32>
    "tpu.trace_start"() <{level = 10 : i32, message = "bqd,bkd->bqk"}> : () -> ()
    %cst_25 = arith.constant dense<0.000000e+00> : vector<8x8x8xf32>
    %77 = tpu.matmul %66, %67, %cst_25 {dimension_numbers = #tpu.dot_dimension_numbers<[2], [2], [1], [1], [0, 0, 0, 1, 1, 1], [0], [0]>} : vector<8x8x64xf32>, vector<8x8x64xf32>, vector<8x8x8xf32> -> vector<8x8x8xf32>
    "tpu.trace_stop"() : () -> ()
    %cst_26 = arith.constant 2.500000e-01 : f32
    %78 = vector.broadcast %cst_26 : f32 to vector<8x8x8xf32>
    %79 = arith.mulf %77, %78 : vector<8x8x8xf32>
    %80 = vector.shape_cast %79 : vector<8x8x8xf32> to vector<64x8xf32>
    %cst_27 = arith.constant dense<0xFF800000> : vector<64xf32>
    %81 = vector.multi_reduction <maximumf>, %80, %cst_27 [1] : vector<64x8xf32> to vector<64xf32>
    %82 = vector.shape_cast %81 : vector<64xf32> to vector<64x1xf32>
    %83 = vector.broadcast %82 : vector<64x1xf32> to vector<64x8xf32>
    %84 = arith.subf %80, %83 : vector<64x8xf32>
    %85 = math.exp %84 : vector<64x8xf32>
    %cst_28 = arith.constant dense<0.000000e+00> : vector<64xf32>
    %86 = vector.multi_reduction <add>, %85, %cst_28 [1] : vector<64x8xf32> to vector<64xf32>
    %87 = vector.shape_cast %86 : vector<64xf32> to vector<64x1xf32>
    %88 = vector.broadcast %87 : vector<64x1xf32> to vector<64x8xf32>
    %89 = arith.divf %85, %88 : vector<64x8xf32>
    %90 = vector.shape_cast %89 : vector<64x8xf32> to vector<8x8x8xf32>
    "tpu.trace_start"() <{level = 10 : i32, message = "bqk,bkd->bqd"}> : () -> ()
    %cst_29 = arith.constant dense<0.000000e+00> : vector<8x8x64xf32>
    %91 = tpu.matmul %90, %76, %cst_29 {dimension_numbers = #tpu.dot_dimension_numbers<[2], [1], [1], [2], [0, 0, 0, 1, 1, 2], [0], [0]>} : vector<8x8x8xf32>, vector<8x8x64xf32>, vector<8x8x64xf32> -> vector<8x8x64xf32>
    "tpu.trace_stop"() : () -> ()
    %92 = vector.extract_strided_slice %91 {offsets = [0, 0, 0], sizes = [2, 8, 64], strides = [1, 1, 1]} : vector<8x8x64xf32> to vector<2x8x64xf32>
    %93 = vector.extract_strided_slice %91 {offsets = [2, 0, 0], sizes = [2, 8, 64], strides = [1, 1, 1]} : vector<8x8x64xf32> to vector<2x8x64xf32>
    %94 = arith.addf %92, %93 : vector<2x8x64xf32>
    %95 = vector.extract_strided_slice %91 {offsets = [4, 0, 0], sizes = [2, 8, 64], strides = [1, 1, 1]} : vector<8x8x64xf32> to vector<2x8x64xf32>
    %96 = arith.addf %94, %95 : vector<2x8x64xf32>
    %97 = vector.extract_strided_slice %91 {offsets = [6, 0, 0], sizes = [2, 8, 64], strides = [1, 1, 1]} : vector<8x8x64xf32> to vector<2x8x64xf32>
    %98 = arith.addf %96, %97 : vector<2x8x64xf32>
    %99 = vector.shape_cast %98 : vector<2x8x64xf32> to vector<16x64xf32>
    %c0_30 = arith.constant 0 : index
    %c0_31 = arith.constant 0 : index
    %c0_32 = arith.constant 0 : index
    %100 = vector.load %arg3[%c0_30, %c0_31, %c0_32] : memref<2x64x64xf32, #tpu.memory_space<vmem>>, vector<1x64x64xf32>
    %101 = vector.shape_cast %100 : vector<1x64x64xf32> to vector<64x64xf32>
    %cst_33 = arith.constant dense<0.000000e+00> : vector<16x64xf32>
    %102 = tpu.matmul %99, %101, %cst_33 {dimension_numbers = #tpu.dot_dimension_numbers<[1], [0], [0], [1], [0, 0, 1, 1], [], []>} : vector<16x64xf32>, vector<64x64xf32>, vector<16x64xf32> -> vector<16x64xf32>
    %c3 = arith.constant 3 : index
    %c0_34 = arith.constant 0 : index
    %103 = vector.load %arg6[%c3, %c0_34] : memref<21x128xf32, #tpu.memory_space<vmem>>, vector<1x64xf32>
    %104 = vector.broadcast %103 : vector<1x64xf32> to vector<16x64xf32>
    %105 = arith.addf %102, %104 : vector<16x64xf32>
    %106 = arith.addf %7, %105 : vector<16x64xf32>
    %c4 = arith.constant 4 : index
    %c0_35 = arith.constant 0 : index
    %107 = vector.load %arg6[%c4, %c0_35] : memref<21x128xf32, #tpu.memory_space<vmem>>, vector<1x64xf32>
    %c5 = arith.constant 5 : index
    %c0_36 = arith.constant 0 : index
    %108 = vector.load %arg6[%c5, %c0_36] : memref<21x128xf32, #tpu.memory_space<vmem>>, vector<1x64xf32>
    %cst_37 = arith.constant dense<0.000000e+00> : vector<16xf32>
    %109 = vector.multi_reduction <add>, %106, %cst_37 [1] : vector<16x64xf32> to vector<16xf32>
    %110 = vector.shape_cast %109 : vector<16xf32> to vector<16x1xf32>
    %cst_38 = arith.constant 6.400000e+01 : f32
    %111 = vector.broadcast %cst_38 : f32 to vector<16x1xf32>
    %112 = arith.divf %110, %111 : vector<16x1xf32>
    %113 = vector.broadcast %112 : vector<16x1xf32> to vector<16x64xf32>
    %114 = arith.subf %106, %113 : vector<16x64xf32>
    %115 = arith.mulf %114, %114 : vector<16x64xf32>
    %cst_39 = arith.constant dense<0.000000e+00> : vector<16xf32>
    %116 = vector.multi_reduction <add>, %115, %cst_39 [1] : vector<16x64xf32> to vector<16xf32>
    %117 = vector.shape_cast %116 : vector<16xf32> to vector<16x1xf32>
    %cst_40 = arith.constant 6.400000e+01 : f32
    %118 = vector.broadcast %cst_40 : f32 to vector<16x1xf32>
    %119 = arith.divf %117, %118 : vector<16x1xf32>
    %cst_41 = arith.constant 9.99999974E-6 : f32
    %120 = vector.broadcast %cst_41 : f32 to vector<16x1xf32>
    %121 = arith.addf %119, %120 : vector<16x1xf32>
    %122 = math.rsqrt %121 : vector<16x1xf32>
    %123 = vector.broadcast %112 : vector<16x1xf32> to vector<16x64xf32>
    %124 = arith.subf %106, %123 : vector<16x64xf32>
    %125 = vector.broadcast %122 : vector<16x1xf32> to vector<16x64xf32>
    %126 = arith.mulf %124, %125 : vector<16x64xf32>
    %127 = vector.broadcast %107 : vector<1x64xf32> to vector<16x64xf32>
    %128 = arith.mulf %126, %127 : vector<16x64xf32>
    %129 = vector.broadcast %108 : vector<1x64xf32> to vector<16x64xf32>
    %130 = arith.addf %128, %129 : vector<16x64xf32>
    %c0_42 = arith.constant 0 : index
    %c0_43 = arith.constant 0 : index
    %c0_44 = arith.constant 0 : index
    %131 = vector.load %arg4[%c0_42, %c0_43, %c0_44] : memref<2x64x128xf32, #tpu.memory_space<vmem>>, vector<1x64x128xf32>
    %132 = vector.shape_cast %131 : vector<1x64x128xf32> to vector<64x128xf32>
    %cst_45 = arith.constant dense<0.000000e+00> : vector<16x128xf32>
    %133 = tpu.matmul %130, %132, %cst_45 {dimension_numbers = #tpu.dot_dimension_numbers<[1], [0], [0], [1], [0, 0, 1, 1], [], []>} : vector<16x64xf32>, vector<64x128xf32>, vector<16x128xf32> -> vector<16x128xf32>
    %c6 = arith.constant 6 : index
    %c0_46 = arith.constant 0 : index
    %134 = vector.load %arg6[%c6, %c0_46] : memref<21x128xf32, #tpu.memory_space<vmem>>, vector<1x128xf32>
    %135 = vector.broadcast %134 : vector<1x128xf32> to vector<16x128xf32>
    %136 = arith.addf %133, %135 : vector<16x128xf32>
    %cst_47 = arith.constant 0.000000e+00 : f32
    %137 = vector.broadcast %cst_47 : f32 to vector<16x128xf32>
    %138 = arith.maximumf %136, %137 : vector<16x128xf32>
    %c0_48 = arith.constant 0 : index
    %c0_49 = arith.constant 0 : index
    %c0_50 = arith.constant 0 : index
    %139 = vector.load %arg5[%c0_48, %c0_49, %c0_50] : memref<2x128x64xf32, #tpu.memory_space<vmem>>, vector<1x128x64xf32>
    %140 = vector.shape_cast %139 : vector<1x128x64xf32> to vector<128x64xf32>
    %cst_51 = arith.constant dense<0.000000e+00> : vector<16x64xf32>
    %141 = tpu.matmul %138, %140, %cst_51 {dimension_numbers = #tpu.dot_dimension_numbers<[1], [0], [0], [1], [0, 0, 1, 1], [], []>} : vector<16x128xf32>, vector<128x64xf32>, vector<16x64xf32> -> vector<16x64xf32>
    %c7 = arith.constant 7 : index
    %c0_52 = arith.constant 0 : index
    %142 = vector.load %arg6[%c7, %c0_52] : memref<21x128xf32, #tpu.memory_space<vmem>>, vector<1x64xf32>
    %143 = vector.broadcast %142 : vector<1x64xf32> to vector<16x64xf32>
    %144 = arith.addf %141, %143 : vector<16x64xf32>
    %145 = arith.addf %130, %144 : vector<16x64xf32>
    %c8 = arith.constant 8 : index
    %c0_53 = arith.constant 0 : index
    %146 = vector.load %arg6[%c8, %c0_53] : memref<21x128xf32, #tpu.memory_space<vmem>>, vector<1x64xf32>
    %c9 = arith.constant 9 : index
    %c0_54 = arith.constant 0 : index
    %147 = vector.load %arg6[%c9, %c0_54] : memref<21x128xf32, #tpu.memory_space<vmem>>, vector<1x64xf32>
    %cst_55 = arith.constant dense<0.000000e+00> : vector<16xf32>
    %148 = vector.multi_reduction <add>, %145, %cst_55 [1] : vector<16x64xf32> to vector<16xf32>
    %149 = vector.shape_cast %148 : vector<16xf32> to vector<16x1xf32>
    %cst_56 = arith.constant 6.400000e+01 : f32
    %150 = vector.broadcast %cst_56 : f32 to vector<16x1xf32>
    %151 = arith.divf %149, %150 : vector<16x1xf32>
    %152 = vector.broadcast %151 : vector<16x1xf32> to vector<16x64xf32>
    %153 = arith.subf %145, %152 : vector<16x64xf32>
    %154 = arith.mulf %153, %153 : vector<16x64xf32>
    %cst_57 = arith.constant dense<0.000000e+00> : vector<16xf32>
    %155 = vector.multi_reduction <add>, %154, %cst_57 [1] : vector<16x64xf32> to vector<16xf32>
    %156 = vector.shape_cast %155 : vector<16xf32> to vector<16x1xf32>
    %cst_58 = arith.constant 6.400000e+01 : f32
    %157 = vector.broadcast %cst_58 : f32 to vector<16x1xf32>
    %158 = arith.divf %156, %157 : vector<16x1xf32>
    %cst_59 = arith.constant 9.99999974E-6 : f32
    %159 = vector.broadcast %cst_59 : f32 to vector<16x1xf32>
    %160 = arith.addf %158, %159 : vector<16x1xf32>
    %161 = math.rsqrt %160 : vector<16x1xf32>
    %162 = vector.broadcast %151 : vector<16x1xf32> to vector<16x64xf32>
    %163 = arith.subf %145, %162 : vector<16x64xf32>
    %164 = vector.broadcast %161 : vector<16x1xf32> to vector<16x64xf32>
    %165 = arith.mulf %163, %164 : vector<16x64xf32>
    %166 = vector.broadcast %146 : vector<1x64xf32> to vector<16x64xf32>
    %167 = arith.mulf %165, %166 : vector<16x64xf32>
    %168 = vector.broadcast %147 : vector<1x64xf32> to vector<16x64xf32>
    %169 = arith.addf %167, %168 : vector<16x64xf32>
    %c1_60 = arith.constant 1 : index
    %c0_61 = arith.constant 0 : index
    %c0_62 = arith.constant 0 : index
    %c0_63 = arith.constant 0 : index
    %170 = vector.load %arg2[%c1_60, %c0_61, %c0_62, %c0_63] : memref<2x3x64x64xf32, #tpu.memory_space<vmem>>, vector<1x1x64x64xf32>
    %171 = vector.shape_cast %170 : vector<1x1x64x64xf32> to vector<64x64xf32>
    %cst_64 = arith.constant dense<0.000000e+00> : vector<16x64xf32>
    %172 = tpu.matmul %169, %171, %cst_64 {dimension_numbers = #tpu.dot_dimension_numbers<[1], [0], [0], [1], [0, 0, 1, 1], [], []>} : vector<16x64xf32>, vector<64x64xf32>, vector<16x64xf32> -> vector<16x64xf32>
    %c10 = arith.constant 10 : index
    %c0_65 = arith.constant 0 : index
    %173 = vector.load %arg6[%c10, %c0_65] : memref<21x128xf32, #tpu.memory_space<vmem>>, vector<1x64xf32>
    %174 = vector.broadcast %173 : vector<1x64xf32> to vector<16x64xf32>
    %175 = arith.addf %172, %174 : vector<16x64xf32>
    %c1_66 = arith.constant 1 : index
    %c1_67 = arith.constant 1 : index
    %c0_68 = arith.constant 0 : index
    %c0_69 = arith.constant 0 : index
    %176 = vector.load %arg2[%c1_66, %c1_67, %c0_68, %c0_69] : memref<2x3x64x64xf32, #tpu.memory_space<vmem>>, vector<1x1x64x64xf32>
    %177 = vector.shape_cast %176 : vector<1x1x64x64xf32> to vector<64x64xf32>
    %cst_70 = arith.constant dense<0.000000e+00> : vector<16x64xf32>
    %178 = tpu.matmul %169, %177, %cst_70 {dimension_numbers = #tpu.dot_dimension_numbers<[1], [0], [0], [1], [0, 0, 1, 1], [], []>} : vector<16x64xf32>, vector<64x64xf32>, vector<16x64xf32> -> vector<16x64xf32>
    %c11 = arith.constant 11 : index
    %c0_71 = arith.constant 0 : index
    %179 = vector.load %arg6[%c11, %c0_71] : memref<21x128xf32, #tpu.memory_space<vmem>>, vector<1x64xf32>
    %180 = vector.broadcast %179 : vector<1x64xf32> to vector<16x64xf32>
    %181 = arith.addf %178, %180 : vector<16x64xf32>
    %c1_72 = arith.constant 1 : index
    %c2_73 = arith.constant 2 : index
    %c0_74 = arith.constant 0 : index
    %c0_75 = arith.constant 0 : index
    %182 = vector.load %arg2[%c1_72, %c2_73, %c0_74, %c0_75] : memref<2x3x64x64xf32, #tpu.memory_space<vmem>>, vector<1x1x64x64xf32>
    %183 = vector.shape_cast %182 : vector<1x1x64x64xf32> to vector<64x64xf32>
    %cst_76 = arith.constant dense<0.000000e+00> : vector<16x64xf32>
    %184 = tpu.matmul %169, %183, %cst_76 {dimension_numbers = #tpu.dot_dimension_numbers<[1], [0], [0], [1], [0, 0, 1, 1], [], []>} : vector<16x64xf32>, vector<64x64xf32>, vector<16x64xf32> -> vector<16x64xf32>
    %c12 = arith.constant 12 : index
    %c0_77 = arith.constant 0 : index
    %185 = vector.load %arg6[%c12, %c0_77] : memref<21x128xf32, #tpu.memory_space<vmem>>, vector<1x64xf32>
    %186 = vector.broadcast %185 : vector<1x64xf32> to vector<16x64xf32>
    %187 = arith.addf %184, %186 : vector<16x64xf32>
    %188 = vector.shape_cast %175 : vector<16x64xf32> to vector<2x8x64xf32>
    %189 = vector.shape_cast %181 : vector<16x64xf32> to vector<2x8x64xf32>
    %190 = vector.shape_cast %187 : vector<16x64xf32> to vector<2x8x64xf32>
    %191 = vector.broadcast %15 : vector<1x1x64xf32> to vector<2x8x64xf32>
    %192 = arith.mulf %188, %191 : vector<2x8x64xf32>
    %193 = vector.broadcast %22 : vector<1x1x64xf32> to vector<2x8x64xf32>
    %194 = arith.mulf %188, %193 : vector<2x8x64xf32>
    %195 = vector.broadcast %29 : vector<1x1x64xf32> to vector<2x8x64xf32>
    %196 = arith.mulf %188, %195 : vector<2x8x64xf32>
    %197 = vector.broadcast %36 : vector<1x1x64xf32> to vector<2x8x64xf32>
    %198 = arith.mulf %188, %197 : vector<2x8x64xf32>
    %199 = tpu.concatenate %192, %194, %196, %198 in 0 : vector<2x8x64xf32>, vector<2x8x64xf32>, vector<2x8x64xf32>, vector<2x8x64xf32> -> vector<8x8x64xf32>
    %200 = tpu.concatenate %189, %189, %189, %189 in 0 : vector<2x8x64xf32>, vector<2x8x64xf32>, vector<2x8x64xf32>, vector<2x8x64xf32> -> vector<8x8x64xf32>
    %201 = vector.broadcast %15 : vector<1x1x64xf32> to vector<2x8x64xf32>
    %202 = arith.mulf %190, %201 : vector<2x8x64xf32>
    %203 = vector.broadcast %22 : vector<1x1x64xf32> to vector<2x8x64xf32>
    %204 = arith.mulf %190, %203 : vector<2x8x64xf32>
    %205 = vector.broadcast %29 : vector<1x1x64xf32> to vector<2x8x64xf32>
    %206 = arith.mulf %190, %205 : vector<2x8x64xf32>
    %207 = vector.broadcast %36 : vector<1x1x64xf32> to vector<2x8x64xf32>
    %208 = arith.mulf %190, %207 : vector<2x8x64xf32>
    %209 = tpu.concatenate %202, %204, %206, %208 in 0 : vector<2x8x64xf32>, vector<2x8x64xf32>, vector<2x8x64xf32>, vector<2x8x64xf32> -> vector<8x8x64xf32>
    "tpu.trace_start"() <{level = 10 : i32, message = "bqd,bkd->bqk"}> : () -> ()
    %cst_78 = arith.constant dense<0.000000e+00> : vector<8x8x8xf32>
    %210 = tpu.matmul %199, %200, %cst_78 {dimension_numbers = #tpu.dot_dimension_numbers<[2], [2], [1], [1], [0, 0, 0, 1, 1, 1], [0], [0]>} : vector<8x8x64xf32>, vector<8x8x64xf32>, vector<8x8x8xf32> -> vector<8x8x8xf32>
    "tpu.trace_stop"() : () -> ()
    %cst_79 = arith.constant 2.500000e-01 : f32
    %211 = vector.broadcast %cst_79 : f32 to vector<8x8x8xf32>
    %212 = arith.mulf %210, %211 : vector<8x8x8xf32>
    %213 = vector.shape_cast %212 : vector<8x8x8xf32> to vector<64x8xf32>
    %cst_80 = arith.constant dense<0xFF800000> : vector<64xf32>
    %214 = vector.multi_reduction <maximumf>, %213, %cst_80 [1] : vector<64x8xf32> to vector<64xf32>
    %215 = vector.shape_cast %214 : vector<64xf32> to vector<64x1xf32>
    %216 = vector.broadcast %215 : vector<64x1xf32> to vector<64x8xf32>
    %217 = arith.subf %213, %216 : vector<64x8xf32>
    %218 = math.exp %217 : vector<64x8xf32>
    %cst_81 = arith.constant dense<0.000000e+00> : vector<64xf32>
    %219 = vector.multi_reduction <add>, %218, %cst_81 [1] : vector<64x8xf32> to vector<64xf32>
    %220 = vector.shape_cast %219 : vector<64xf32> to vector<64x1xf32>
    %221 = vector.broadcast %220 : vector<64x1xf32> to vector<64x8xf32>
    %222 = arith.divf %218, %221 : vector<64x8xf32>
    %223 = vector.shape_cast %222 : vector<64x8xf32> to vector<8x8x8xf32>
    "tpu.trace_start"() <{level = 10 : i32, message = "bqk,bkd->bqd"}> : () -> ()
    %cst_82 = arith.constant dense<0.000000e+00> : vector<8x8x64xf32>
    %224 = tpu.matmul %223, %209, %cst_82 {dimension_numbers = #tpu.dot_dimension_numbers<[2], [1], [1], [2], [0, 0, 0, 1, 1, 2], [0], [0]>} : vector<8x8x8xf32>, vector<8x8x64xf32>, vector<8x8x64xf32> -> vector<8x8x64xf32>
    "tpu.trace_stop"() : () -> ()
    %225 = vector.extract_strided_slice %224 {offsets = [0, 0, 0], sizes = [2, 8, 64], strides = [1, 1, 1]} : vector<8x8x64xf32> to vector<2x8x64xf32>
    %226 = vector.extract_strided_slice %224 {offsets = [2, 0, 0], sizes = [2, 8, 64], strides = [1, 1, 1]} : vector<8x8x64xf32> to vector<2x8x64xf32>
    %227 = arith.addf %225, %226 : vector<2x8x64xf32>
    %228 = vector.extract_strided_slice %224 {offsets = [4, 0, 0], sizes = [2, 8, 64], strides = [1, 1, 1]} : vector<8x8x64xf32> to vector<2x8x64xf32>
    %229 = arith.addf %227, %228 : vector<2x8x64xf32>
    %230 = vector.extract_strided_slice %224 {offsets = [6, 0, 0], sizes = [2, 8, 64], strides = [1, 1, 1]} : vector<8x8x64xf32> to vector<2x8x64xf32>
    %231 = arith.addf %229, %230 : vector<2x8x64xf32>
    %232 = vector.shape_cast %231 : vector<2x8x64xf32> to vector<16x64xf32>
    %c1_83 = arith.constant 1 : index
    %c0_84 = arith.constant 0 : index
    %c0_85 = arith.constant 0 : index
    %233 = vector.load %arg3[%c1_83, %c0_84, %c0_85] : memref<2x64x64xf32, #tpu.memory_space<vmem>>, vector<1x64x64xf32>
    %234 = vector.shape_cast %233 : vector<1x64x64xf32> to vector<64x64xf32>
    %cst_86 = arith.constant dense<0.000000e+00> : vector<16x64xf32>
    %235 = tpu.matmul %232, %234, %cst_86 {dimension_numbers = #tpu.dot_dimension_numbers<[1], [0], [0], [1], [0, 0, 1, 1], [], []>} : vector<16x64xf32>, vector<64x64xf32>, vector<16x64xf32> -> vector<16x64xf32>
    %c13 = arith.constant 13 : index
    %c0_87 = arith.constant 0 : index
    %236 = vector.load %arg6[%c13, %c0_87] : memref<21x128xf32, #tpu.memory_space<vmem>>, vector<1x64xf32>
    %237 = vector.broadcast %236 : vector<1x64xf32> to vector<16x64xf32>
    %238 = arith.addf %235, %237 : vector<16x64xf32>
    %239 = arith.addf %169, %238 : vector<16x64xf32>
    %c14 = arith.constant 14 : index
    %c0_88 = arith.constant 0 : index
    %240 = vector.load %arg6[%c14, %c0_88] : memref<21x128xf32, #tpu.memory_space<vmem>>, vector<1x64xf32>
    %c15 = arith.constant 15 : index
    %c0_89 = arith.constant 0 : index
    %241 = vector.load %arg6[%c15, %c0_89] : memref<21x128xf32, #tpu.memory_space<vmem>>, vector<1x64xf32>
    %cst_90 = arith.constant dense<0.000000e+00> : vector<16xf32>
    %242 = vector.multi_reduction <add>, %239, %cst_90 [1] : vector<16x64xf32> to vector<16xf32>
    %243 = vector.shape_cast %242 : vector<16xf32> to vector<16x1xf32>
    %cst_91 = arith.constant 6.400000e+01 : f32
    %244 = vector.broadcast %cst_91 : f32 to vector<16x1xf32>
    %245 = arith.divf %243, %244 : vector<16x1xf32>
    %246 = vector.broadcast %245 : vector<16x1xf32> to vector<16x64xf32>
    %247 = arith.subf %239, %246 : vector<16x64xf32>
    %248 = arith.mulf %247, %247 : vector<16x64xf32>
    %cst_92 = arith.constant dense<0.000000e+00> : vector<16xf32>
    %249 = vector.multi_reduction <add>, %248, %cst_92 [1] : vector<16x64xf32> to vector<16xf32>
    %250 = vector.shape_cast %249 : vector<16xf32> to vector<16x1xf32>
    %cst_93 = arith.constant 6.400000e+01 : f32
    %251 = vector.broadcast %cst_93 : f32 to vector<16x1xf32>
    %252 = arith.divf %250, %251 : vector<16x1xf32>
    %cst_94 = arith.constant 9.99999974E-6 : f32
    %253 = vector.broadcast %cst_94 : f32 to vector<16x1xf32>
    %254 = arith.addf %252, %253 : vector<16x1xf32>
    %255 = math.rsqrt %254 : vector<16x1xf32>
    %256 = vector.broadcast %245 : vector<16x1xf32> to vector<16x64xf32>
    %257 = arith.subf %239, %256 : vector<16x64xf32>
    %258 = vector.broadcast %255 : vector<16x1xf32> to vector<16x64xf32>
    %259 = arith.mulf %257, %258 : vector<16x64xf32>
    %260 = vector.broadcast %240 : vector<1x64xf32> to vector<16x64xf32>
    %261 = arith.mulf %259, %260 : vector<16x64xf32>
    %262 = vector.broadcast %241 : vector<1x64xf32> to vector<16x64xf32>
    %263 = arith.addf %261, %262 : vector<16x64xf32>
    %c1_95 = arith.constant 1 : index
    %c0_96 = arith.constant 0 : index
    %c0_97 = arith.constant 0 : index
    %264 = vector.load %arg4[%c1_95, %c0_96, %c0_97] : memref<2x64x128xf32, #tpu.memory_space<vmem>>, vector<1x64x128xf32>
    %265 = vector.shape_cast %264 : vector<1x64x128xf32> to vector<64x128xf32>
    %cst_98 = arith.constant dense<0.000000e+00> : vector<16x128xf32>
    %266 = tpu.matmul %263, %265, %cst_98 {dimension_numbers = #tpu.dot_dimension_numbers<[1], [0], [0], [1], [0, 0, 1, 1], [], []>} : vector<16x64xf32>, vector<64x128xf32>, vector<16x128xf32> -> vector<16x128xf32>
    %c16 = arith.constant 16 : index
    %c0_99 = arith.constant 0 : index
    %267 = vector.load %arg6[%c16, %c0_99] : memref<21x128xf32, #tpu.memory_space<vmem>>, vector<1x128xf32>
    %268 = vector.broadcast %267 : vector<1x128xf32> to vector<16x128xf32>
    %269 = arith.addf %266, %268 : vector<16x128xf32>
    %cst_100 = arith.constant 0.000000e+00 : f32
    %270 = vector.broadcast %cst_100 : f32 to vector<16x128xf32>
    %271 = arith.maximumf %269, %270 : vector<16x128xf32>
    %c1_101 = arith.constant 1 : index
    %c0_102 = arith.constant 0 : index
    %c0_103 = arith.constant 0 : index
    %272 = vector.load %arg5[%c1_101, %c0_102, %c0_103] : memref<2x128x64xf32, #tpu.memory_space<vmem>>, vector<1x128x64xf32>
    %273 = vector.shape_cast %272 : vector<1x128x64xf32> to vector<128x64xf32>
    %cst_104 = arith.constant dense<0.000000e+00> : vector<16x64xf32>
    %274 = tpu.matmul %271, %273, %cst_104 {dimension_numbers = #tpu.dot_dimension_numbers<[1], [0], [0], [1], [0, 0, 1, 1], [], []>} : vector<16x128xf32>, vector<128x64xf32>, vector<16x64xf32> -> vector<16x64xf32>
    %c17 = arith.constant 17 : index
    %c0_105 = arith.constant 0 : index
    %275 = vector.load %arg6[%c17, %c0_105] : memref<21x128xf32, #tpu.memory_space<vmem>>, vector<1x64xf32>
    %276 = vector.broadcast %275 : vector<1x64xf32> to vector<16x64xf32>
    %277 = arith.addf %274, %276 : vector<16x64xf32>
    %278 = arith.addf %263, %277 : vector<16x64xf32>
    %c18 = arith.constant 18 : index
    %c0_106 = arith.constant 0 : index
    %279 = vector.load %arg6[%c18, %c0_106] : memref<21x128xf32, #tpu.memory_space<vmem>>, vector<1x64xf32>
    %c19 = arith.constant 19 : index
    %c0_107 = arith.constant 0 : index
    %280 = vector.load %arg6[%c19, %c0_107] : memref<21x128xf32, #tpu.memory_space<vmem>>, vector<1x64xf32>
    %cst_108 = arith.constant dense<0.000000e+00> : vector<16xf32>
    %281 = vector.multi_reduction <add>, %278, %cst_108 [1] : vector<16x64xf32> to vector<16xf32>
    %282 = vector.shape_cast %281 : vector<16xf32> to vector<16x1xf32>
    %cst_109 = arith.constant 6.400000e+01 : f32
    %283 = vector.broadcast %cst_109 : f32 to vector<16x1xf32>
    %284 = arith.divf %282, %283 : vector<16x1xf32>
    %285 = vector.broadcast %284 : vector<16x1xf32> to vector<16x64xf32>
    %286 = arith.subf %278, %285 : vector<16x64xf32>
    %287 = arith.mulf %286, %286 : vector<16x64xf32>
    %cst_110 = arith.constant dense<0.000000e+00> : vector<16xf32>
    %288 = vector.multi_reduction <add>, %287, %cst_110 [1] : vector<16x64xf32> to vector<16xf32>
    %289 = vector.shape_cast %288 : vector<16xf32> to vector<16x1xf32>
    %cst_111 = arith.constant 6.400000e+01 : f32
    %290 = vector.broadcast %cst_111 : f32 to vector<16x1xf32>
    %291 = arith.divf %289, %290 : vector<16x1xf32>
    %cst_112 = arith.constant 9.99999974E-6 : f32
    %292 = vector.broadcast %cst_112 : f32 to vector<16x1xf32>
    %293 = arith.addf %291, %292 : vector<16x1xf32>
    %294 = math.rsqrt %293 : vector<16x1xf32>
    %295 = vector.broadcast %284 : vector<16x1xf32> to vector<16x64xf32>
    %296 = arith.subf %278, %295 : vector<16x64xf32>
    %297 = vector.broadcast %294 : vector<16x1xf32> to vector<16x64xf32>
    %298 = arith.mulf %296, %297 : vector<16x64xf32>
    %299 = vector.broadcast %279 : vector<1x64xf32> to vector<16x64xf32>
    %300 = arith.mulf %298, %299 : vector<16x64xf32>
    %301 = vector.broadcast %280 : vector<1x64xf32> to vector<16x64xf32>
    %302 = arith.addf %300, %301 : vector<16x64xf32>
    %303 = vector.shape_cast %302 : vector<16x64xf32> to vector<2x8x64xf32>
    %304 = vector.extract_strided_slice %303 {offsets = [0, 0, 0], sizes = [2, 1, 64], strides = [1, 1, 1]} : vector<2x8x64xf32> to vector<2x1x64xf32>
    %305 = vector.shape_cast %304 : vector<2x1x64xf32> to vector<2x64xf32>
    %c20 = arith.constant 20 : index
    %c0_113 = arith.constant 0 : index
    %306 = vector.load %arg6[%c20, %c0_113] : memref<21x128xf32, #tpu.memory_space<vmem>>, vector<1x128xf32>
    %c0_114 = arith.constant 0 : index
    %c0_115 = arith.constant 0 : index
    %307 = vector.load %arg7[%c0_114, %c0_115] : memref<64x128xf32, #tpu.memory_space<vmem>>, vector<64x128xf32>
    %cst_116 = arith.constant dense<0.000000e+00> : vector<2x128xf32>
    %308 = tpu.matmul %305, %307, %cst_116 {dimension_numbers = #tpu.dot_dimension_numbers<[1], [0], [0], [1], [0, 0, 1, 1], [], []>} : vector<2x64xf32>, vector<64x128xf32>, vector<2x128xf32> -> vector<2x128xf32>
    %309 = vector.broadcast %306 : vector<1x128xf32> to vector<2x128xf32>
    %310 = arith.addf %308, %309 : vector<2x128xf32>
    %c0_117 = arith.constant 0 : index
    %c0_118 = arith.constant 0 : index
    %311 = vector.load %arg8[%c0_117, %c0_118] : memref<2x128xf32, #tpu.memory_space<vmem>>, vector<2x128xf32>
    tpu.vector_store %arg8[%c0_117, %c0_118], %310 {strides = array<i32>} : memref<2x128xf32, #tpu.memory_space<vmem>>, vector<2x128xf32>,
    return
  }
}

</mosaic_0001>

<bundles_post_ra>
// kernel: forward.1
= control target key start
LH: loop header
LB: loop body
LE: loop exit
PB: predicated region body
PF: predicated region fallthrough
CT: control target
= control target key end

     0   :  { %13 = vsyncpa [#allocation3], 0  ;;  %s6007_s0 = inlined_call_operand.vmem [shape: s32[16,1], index: 0, kind: input, shape index: {}]   ;;  %s6008_s1 = inlined_call_operand.vmem [shape: f32[128,64], index: 1, kind: input, shape index: {}]   ;;  %s6009_s2 = inlined_call_operand.vmem [shape: f32[2,3,64,64], index: 2, kind: input, shape index: {}]   ;;  %s6010_s3 = inlined_call_operand.vmem [shape: f32[2,64,64], index: 3, kind: input, shape index: {}]   ;;  %s6011_s4 = inlined_call_operand.hbm [shape: f32[2,64,128], index: 4, kind: input, shape index: {}]   ;;  %s6012_s5 = inlined_call_operand.vmem [shape: f32[2,128,64], index: 5, kind: input, shape index: {}]   ;;  %s6013_s6 = inlined_call_operand.vmem [shape: f32[21,128], index: 6, kind: input, shape index: {}]   ;;  %s6014_s7 = inlined_call_operand.vmem [shape: f32[64,128], index: 7, kind: input, shape index: {}]   ;;  %s6015_s8 = inlined_call_operand.hbm [shape: f32[2,128], index: 8, kind: output, shape index: {}]  }
   0x1   :  { %14 = vsyncpa [#allocation4], 0  ;;  %s5148_s27 = smov [#allocation2]  }
   0x2   :  { %s28_s28 = sshll.u32 %s5148_s27, 4  ;;  %s29_s28 = int_to_ptr.vmem [resolvable:$true] %s28_s28 }
   0x3   :  { %s5112_s29 = scalar_lea.vmem %s29_s28, 2048  ;;  %p5117_p1 = scmp.lt.s32.totalorder %s29_s28, %s29_s28 }
   0x4   :  { %p5113_p0 = scmp.ne.s32.totalorder %s29_s28, %s5112_s29  ;;  %p5118_p2 = scmp.lt.s32.totalorder %s5112_s29, %s5112_s29 }
   0x6   :  { %p5119_p3 = por %p5118_p2, %p5117_p1 }
   0x8   :  { %p5120_p4 = pnand %p5119_p3, %p5113_p0 }
   0xa   :  { %5123 = shalt.err (!%p5120_p4)
}
   0xb   :  { %s5149_s30 = smov 128   ;;  %s5150_s9 = smov 8  }
   0xc   :  { %34 = dma.hbm_to_vmem [thread:$0]  %s6011_s4, 2048, %s29_s28, [#allocation3], %s5149_s30, %s5149_s30, %s5150_s9  }
   0xd   :  { %5144 = dma.done.wait [#allocation3], 2048  }
   0xe   :  { %5145 = vsyncadd [#allocation3], 4294965248  ;;  %v5151_v0 = vmov 0   ;;  %v44_v1 = vld [vmem:[%s6007_s0] sm:$0xff]  ;;  %v75_v2 = vld [vmem:[%s6008_s1 + $0x78] sm:$0xff]  ;;  %v46_v27 = vlaneseq  ;;  %v5152_v30 = vmov 1.0  }
   0xf   :  { %5023 = vset.pattern.permute.xlu0 %v5151_v0  ;;  %4541 = vmatprep.subr.mxu0 %v75_v2  ;;  %v74_v3 = vld [vmem:[%s6008_s1 + $0x70] sm:$0xff]  ;;  %v45_v4 = vld [vmem:[%s6007_s0 + $0x8] sm:$0xff]  ;;  %v72_v6 = vld [vmem:[%s6008_s1 + $0x60] sm:$0xff]  ;;  %v5153_v41 = vmov 0.0   ;;  %vm184_vm2 = vcmask 523264   ;;  %vm5154_vm3 = vmmov 0  }
  0x10   :  { %49 = vperm.xlu0 %5023, %v44_v1   ;;  %4542 = vmatpush3.msra.mxu0 %v75_v2  ;;  %v73_v5 = vld [vmem:[%s6008_s1 + $0x68] sm:$0xff]  ;;  %v71_v7 = vld [vmem:[%s6008_s1 + $0x58] sm:$0xff]  ;;  %v177_v9 = vld [vmem:[%s6009_s2 + $0x30] sm:$0xff]  ;;  %v5282_v28 = vand.u32 127, %v46_v27  ;;  %vm1058_vm14 = vcmask 64512   ;;  %vm4062_vm15 = vcmask 1041409  }
  0x11   :  { %4543 = vmatprep.subr.mxu0 %v74_v3  ;;  %v178_v8 = vld [vmem:[%s6009_s2 + $0x38] sm:$0xff]  ;;  %v70_v10 = vld [vmem:[%s6008_s1 + $0x50] sm:$0xff]  ;;  %v176_v11 = vld [vmem:[%s6009_s2 + $0x28] sm:$0xff] }
  0x12   :  { %4544 = vmatpush3.msra.mxu0 %v74_v3  ;;  %4576 = vmatprep.subr.mxu1 %v178_v8  ;;  %v69_v12 = vld [vmem:[%s6008_s1 + $0x48] sm:$0xff]  ;;  %v175_v13 = vld [vmem:[%s6009_s2 + $0x20] sm:$0xff]  ;;  %v174_v15 = vld [vmem:[%s6009_s2 + $0x18] sm:$0xff]  ;;  %vm152_vm4 = vcmp.lt.s32.totalorder %v5282_v28, 16  ;;  %vm156_vm5 = vcmp.ge.s32.totalorder %v5282_v28, 16  ;;  %vm157_vm6 = vcmp.lt.s32.totalorder %v5282_v28, 32 }
  0x13   :  { %4545 = vmatprep.subr.mxu0 %v73_v5  ;;  %4577 = vmatpush3.msra.mxu1 %v178_v8  ;;  %v68_v14 = vld [vmem:[%s6008_s1 + $0x40] sm:$0xff]  ;;  %v67_v16 = vld [vmem:[%s6008_s1 + $0x38] sm:$0xff]  ;;  %v173_v17 = vld [vmem:[%s6009_s2 + $0x10] sm:$0xff]  ;;  %v5365_v55 = vsel %vm152_vm4, 1.0, %v5153_v41  ;;  %vm161_vm8 = vcmp.ge.s32.totalorder %v5282_v28, 32  ;;  %vm162_vm9 = vcmp.lt.s32.totalorder %v5282_v28, 48 }
  0x14   :  { %52 = vperm.xlu0 %5023, %v45_v4   ;;  %4546 = vmatpush3.msra.mxu0 %v73_v5  ;;  %v66_v18 = vld [vmem:[%s6008_s1 + $0x30] sm:$0xff]  ;;  %v172_v19 = vld [vmem:[%s6009_s2 + $0x8] sm:$0xff]  ;;  %v64_v21 = vld [vmem:[%s6008_s1 + $0x20] sm:$0xff]  ;;  %vm166_vm11 = vcmp.ge.s32.totalorder %v5282_v28, 48  ;;  %vm167_vm12 = vcmp.lt.s32.totalorder %v5282_v28, 64 }
  0x15   :  { %4547 = vmatprep.subr.mxu0 %v72_v6  ;;  %4578 = vmatprep.subr.mxu1 %v177_v9  ;;  %v65_v20 = vld [vmem:[%s6008_s1 + $0x28] sm:$0xff]  ;;  %v63_v22 = vld [vmem:[%s6008_s1 + $0x18] sm:$0xff]  ;;  %v62_v23 = vld [vmem:[%s6008_s1 + $0x10] sm:$0xff] }
  0x16   :  { %4548 = vmatpush3.msra.mxu0 %v72_v6  ;;  %4579 = vmatpush3.msra.mxu1 %v177_v9  ;;  %v61_v24 = vld [vmem:[%s6008_s1 + $0x8] sm:$0xff]  ;;  %v60_v25 = vld [vmem:[%s6008_s1] sm:$0xff]  ;;  %v4181_v26 = vld [vmem:[%s6009_s2 + $0xb8] sm:$0xff]  ;;  %s5155_s1 = smov [#allocation5]  }
  0x17   :  { %4549 = vmatprep.subr.mxu0 %v71_v7  ;;  %4580 = vmatprep.subr.mxu1 %v176_v11  ;;  %v4180_v32 = vld [vmem:[%s6009_s2 + $0xb0] sm:$0xff]  ;;  %v4179_v33 = vld [vmem:[%s6009_s2 + $0xa8] sm:$0xff]  ;;  %v4178_v34 = vld [vmem:[%s6009_s2 + $0xa0] sm:$0xff]  ;;  %s4143_s16 = sshll.u32 %s5155_s1, 4  ;;  %s4144_s16 = int_to_ptr.vmem [resolvable:$true] %s4143_s16 }
  0x18   :  { %4550 = vmatpush3.msra.mxu0 %v71_v7  ;;  %4581 = vmatpush3.msra.mxu1 %v176_v11  ;;  %v4177_v35 = vld [vmem:[%s6009_s2 + $0x98] sm:$0xff]  ;;  %v4176_v36 = vld [vmem:[%s6009_s2 + $0x90] sm:$0xff]  ;;  %v4175_v37 = vld [vmem:[%s6009_s2 + $0x88] sm:$0xff]  ;;  %s5124_s17 = scalar_lea.vmem %s4144_s16, 32  ;;  %p5129_p6 = scmp.lt.s32.totalorder %s4144_s16, %s4144_s16 }
  0x19   :  { %4551 = vmatprep.subr.mxu0 %v70_v10  ;;  %4582 = vmatprep.subr.mxu1 %v175_v13  ;;  %v171_v38 = vld [vmem:[%s6009_s2] sm:$0xff]  ;;  %v4170_v40 = vld [vmem:[%s6009_s2 + $0x78] sm:$0xff]  ;;  %v4169_v44 = vld [vmem:[%s6009_s2 + $0x70] sm:$0xff]  ;;  %p5125_p5 = scmp.ne.s32.totalorder %s4144_s16, %s5124_s17  ;;  %p5130_p7 = scmp.lt.s32.totalorder %s5124_s17, %s5124_s17 }
  0x1a   :  { %4552 = vmatpush3.msra.mxu0 %v70_v10  ;;  %4583 = vmatpush3.msra.mxu1 %v175_v13  ;;  %v4174_v39 = vld [vmem:[%s6009_s2 + $0x80] sm:$0xff]  ;;  %v4168_v45 = vld [vmem:[%s6009_s2 + $0x68] sm:$0xff]  ;;  %v4166_v47 = vld [vmem:[%s6009_s2 + $0x58] sm:$0xff] }
  0x1b   :  { %4553 = vmatprep.subr.mxu0 %v69_v12  ;;  %4584 = vmatprep.subr.mxu1 %v174_v15  ;;  %v4167_v46 = vld [vmem:[%s6009_s2 + $0x60] sm:$0xff]  ;;  %v4165_v48 = vld [vmem:[%s6009_s2 + $0x50] sm:$0xff]  ;;  %v4164_v49 = vld [vmem:[%s6009_s2 + $0x48] sm:$0xff]  ;;  %p5131_p8 = por %p5130_p7, %p5129_p6 }
  0x1c   :  { %4554 = vmatpush3.msra.mxu0 %v69_v12  ;;  %4585 = vmatpush3.msra.mxu1 %v174_v15  ;;  %v4163_v50 = vld [vmem:[%s6009_s2 + $0x40] sm:$0xff]  ;;  %vm158_vm7 = vmand %vm156_vm5, %vm157_vm6 }
  0x1d   :  { %4555 = vmatprep.subr.mxu0 %v68_v14  ;;  %4586 = vmatprep.subr.mxu1 %v173_v17  ;;  %v4182_v53 = vld [vmem:[%s6013_s6 + $0x2] ss:$0 sm:$0xff]  ;;  %v4160_v60 = vld [vmem:[%s6013_s6] ss:$0 sm:$0xff]  ;;  %v4171_v62 = vld [vmem:[%s6013_s6 + $0x1] ss:$0 sm:$0xff]  ;;  %p5132_p9 = pnand %p5131_p8, %p5125_p5 }
  0x1e   :  { %4556 = vmatpush3.msra.mxu0 %v68_v14  ;;  %4587 = vmatpush3.msra.mxu1 %v173_v17  ;;  %v5389_v5 = vsel %vm158_vm7, 1.0, %v5153_v41  ;;  %vm163_vm10 = vmand %vm161_vm8, %vm162_vm9 }
  0x1f   :  { %4557 = vmatprep.subr.mxu0 %v67_v16  ;;  %4588 = vmatprep.subr.mxu1 %v172_v19  ;;  %v5406_v8 = vsel %vm163_vm10, 1.0, %v5153_v41  ;;  %vm168_vm13 = vmand %vm166_vm11, %vm167_vm12 }
  0x20   :  { %4558 = vmatpush3.msra.mxu0 %v67_v16  ;;  %4589 = vmatpush3.msra.mxu1 %v172_v19  ;;  %v5423_v11 = vsel %vm168_vm13, 1.0, %v5153_v41 }
  0x21   :  { %4559 = vmatprep.subr.mxu0 %v66_v18  ;;  %4590 = vmatprep.subr.mxu1 %v171_v38 }
  0x22   :  { %4560 = vmatpush3.msra.mxu0 %v66_v18  ;;  %4591 = vmatpush3.msra.mxu1 %v171_v38 }
  0x23   :  { %4561 = vmatprep.subr.mxu0 %v65_v20  ;;  %4595 = vmatprep.subr.mxu1 %v4170_v40 }
  0x24   :  { %4562 = vmatpush3.msra.mxu0 %v65_v20 }
  0x25   :  { %4563 = vmatprep.subr.mxu0 %v64_v21 }
  0x26   :  { %4564 = vmatpush3.msra.mxu0 %v64_v21 }
  0x27   :  { %4565 = vmatprep.subr.mxu0 %v63_v22 }
  0x28   :  { %4566 = vmatpush3.msra.mxu0 %v63_v22 }
  0x29   :  { %4567 = vmatprep.subr.mxu0 %v62_v23 }
  0x2a   :  { %4568 = vmatpush3.msra.mxu0 %v62_v23 }
  0x2b   :  { %4569 = vmatprep.subr.mxu0 %v61_v24 }
  0x2c   :  { %4570 = vmatpush3.msra.mxu0 %v61_v24 }
  0x2d   :  { %4571 = vmatprep.subr.mxu0 %v60_v25 }
  0x2e   :  { %4572 = vmatpush3.msra.mxu0 %v60_v25 }
  0x2f   :  { %4614 = vmatprep.subr.mxu0 %v4181_v26 }
  0x8b   :  { %v50_v29 = vpop.permute.xlu0 %49 }
  0x8c   :  { %vm54_vm0 = vcmp.eq.s32.totalorder %v5282_v28, %v50_v29 }
  0x8d   :  { %4573 = vmatprep.mubr.msk.f32.mxu0 %vm54_vm0, %v5152_v30 }
  0x8f   :  { %v53_v31 = vpop.permute.xlu0 %52 }
  0x90   :  { %vm55_vm1 = vcmp.eq.s32.totalorder %v5282_v28, %v53_v31 }
  0x91   :  { %4574 = vmatmul.mubr.msk.f32.vlgmr.msra.gmra.mxu0 %vm55_vm1, %v5152_v30 }
  0x92   :  { %4615 = vmatpush3.msra.mxu0 %v4181_v26 }
  0x93   :  { %4616 = vmatprep.subr.mxu0 %v4180_v32 }
  0x94   :  { %4617 = vmatpush3.msra.mxu0 %v4180_v32 }
  0x95   :  { %4618 = vmatprep.subr.mxu0 %v4179_v33 }
  0x96   :  { %4619 = vmatpush3.msra.mxu0 %v4179_v33 }
  0x97   :  { %4620 = vmatprep.subr.mxu0 %v4178_v34 }
  0x98   :  { %4621 = vmatpush3.msra.mxu0 %v4178_v34 }
  0x99   :  { %4622 = vmatprep.subr.mxu0 %v4177_v35 }
  0x9a   :  { %4623 = vmatpush3.msra.mxu0 %v4177_v35 }
  0x9b   :  { %4624 = vmatprep.subr.mxu0 %v4176_v36 }
  0x9c   :  { %4625 = vmatpush3.msra.mxu0 %v4176_v36 }
  0x9d   :  { %4626 = vmatprep.subr.mxu0 %v4175_v37 }
  0x9e   :  { %4627 = vmatpush3.msra.mxu0 %v4175_v37 }
  0x9f   :  { %4628 = vmatprep.subr.mxu0 %v4174_v39 }
  0xa0   :  { %4629 = vmatpush3.msra.mxu0 %v4174_v39 }
  0xa1   :  { %4673 = vmatprep.subr.mxu0 %v5153_v41 }
 0x151   :  { %v5314_v42 = vpop.f32.mrf.mxu0 }
 0x153   :  { %v5316_v43 = vpop.f32.mrf.mxu0 }
 0x154   :  { %4592 = vmatprep.mubr.msk.f32.mxu1 %vm184_vm2, %v5316_v43  ;;  %4630 = vmatprep.mubr.msk.f32.mxu0 %vm184_vm2, %v5316_v43 }
 0x155   :  { %4593 = vmatmul.mubr.msk.f32.vlgmr.msra.gmra.mxu1 %vm184_vm2, %v5314_v42  ;;  %4631 = vmatmul.mubr.msk.f32.vlgmr.msra.gmra.mxu0 %vm184_vm2, %v5314_v42 }
 0x156   :  { %4596 = vmatpush3.msra.mxu1 %v4170_v40  ;;  %4611 = vmatprep.mubr.msk.f32.mxu1 %vm184_vm2, %v5316_v43 }
 0x157   :  { %4597 = vmatprep.subr.mxu1 %v4169_v44  ;;  %4675 = vmatprep.mubr.msk.f32.mxu0 %vm5154_vm3, %v5153_v41 }
 0x158   :  { %4598 = vmatpush3.msra.mxu1 %v4169_v44 }
 0x159   :  { %4599 = vmatprep.subr.mxu1 %v4168_v45 }
 0x15a   :  { %4600 = vmatpush3.msra.mxu1 %v4168_v45 }
 0x15b   :  { %4601 = vmatprep.subr.mxu1 %v4167_v46 }
 0x15c   :  { %4602 = vmatpush3.msra.mxu1 %v4167_v46 }
 0x15d   :  { %4603 = vmatprep.subr.mxu1 %v4166_v47 }
 0x15e   :  { %4604 = vmatpush3.msra.mxu1 %v4166_v47 }
 0x15f   :  { %4605 = vmatprep.subr.mxu1 %v4165_v48 }
 0x160   :  { %4606 = vmatpush3.msra.mxu1 %v4165_v48 }
 0x161   :  { %4607 = vmatprep.subr.mxu1 %v4164_v49 }
 0x162   :  { %4608 = vmatpush3.msra.mxu1 %v4164_v49 }
 0x163   :  { %4609 = vmatprep.subr.mxu1 %v4163_v50 }
 0x164   :  { %4610 = vmatpush3.msra.mxu1 %v4163_v50 }
 0x165   :  { %4612 = vmatmul.mubr.msk.f32.vlgmr.msra.gmra.mxu1 %vm184_vm2, %v5314_v42  ;;  %4633 = vmatprep.subr.mxu1 %v5153_v41 }
 0x166   :  { %4635 = vmatprep.mubr.msk.f32.mxu1 %vm5154_vm3, %v5153_v41 }
 0x215   :  { %v5356_v51 = vpop.f32.mrf.mxu0  ;;  %v4594_v57 = vpop.f32.mrf.mxu1 }
 0x216   :  { %v263_v1 = vadd.f32 %v4594_v57, %v4160_v60  ;;  %v5431_v13 = vadd.f32 %v5356_v51, %v4182_v53 }
 0x217   :  { %v435_v52 = vpop.f32.mrf.mxu0  ;;  %v257_v58 = vpop.f32.mrf.mxu1 }
 0x218   :  { %v5362_v54 = vadd.f32 %v4182_v53, %v435_v52  ;;  %v258_v61 = vadd.f32 %v4160_v60, %v257_v58  ;;  %v445_v4 = vmul.f32 %v5365_v55, %v263_v1  ;;  %v447_v7 = vmul.f32 %v5389_v5, %v263_v1 }
 0x219   :  { %v449_v10 = vmul.f32 %v5406_v8, %v263_v1  ;;  %v451_v14 = vmul.f32 %v5423_v11, %v263_v1  ;;  %v453_v15 = vmul.f32 %v5365_v55, %v5431_v13 }
 0x21a   :  { %v452_v56 = vmul.f32 %v5365_v55, %v5362_v54  ;;  %v444_v2 = vmul.f32 %v5365_v55, %v258_v61  ;;  %v446_v6 = vmul.f32 %v5389_v5, %v258_v61  ;;  %v448_v9 = vmul.f32 %v5406_v8, %v258_v61 }
 0x21b   :  { %v450_v12 = vmul.f32 %v5423_v11, %v258_v61 }
 0x21c   :  { %4674 = vmatpush3.msra.mxu0 %v452_v56 }
 0x21d   :  { %4683 = vmatprep.subr.mxu0 %v5153_v41 }
 0x225   :  { %v4613_v59 = vpop.f32.mrf.mxu1 }
 0x226   :  { %v352_v3 = vadd.f32 %v4613_v59, %v4171_v62 }
 0x227   :  { %v346_v63 = vpop.f32.mrf.mxu1 }
 0x228   :  { %v347_v0 = vadd.f32 %v4171_v62, %v346_v63 }
 0x22a   :  { %4634 = vmatpush3.xpose.msk.msra.mxu1 %vm184_vm2, %v347_v0 }
 0x22b   :  { %4638 = vmatprep.subr.mxu1 %v5153_v41 }
 0x22d   :  { %4636 = vmatmul.mubr.msk.f32.vlgmr.msra.gmra.mxu1 %vm184_vm2, %v444_v2 }
 0x22e   :  { %4639 = vmatpush3.xpose.msk.msra.mxu1 %vm184_vm2, %v352_v3  ;;  %4640 = vmatprep.mubr.msk.f32.mxu1 %vm5154_vm3, %v5153_v41 }
 0x22f   :  { %4643 = vmatprep.subr.mxu1 %v5153_v41 }
 0x231   :  { %4641 = vmatmul.mubr.msk.f32.vlgmr.msra.gmra.mxu1 %vm184_vm2, %v445_v4 }
 0x232   :  { %4644 = vmatpush3.xpose.msk.msra.mxu1 %vm184_vm2, %v347_v0  ;;  %4645 = vmatprep.mubr.msk.f32.mxu1 %vm5154_vm3, %v5153_v41 }
 0x233   :  { %4648 = vmatprep.subr.mxu1 %v5153_v41 }
 0x235   :  { %4646 = vmatmul.mubr.msk.f32.vlgmr.msra.gmra.mxu1 %vm184_vm2, %v446_v6 }
 0x236   :  { %4649 = vmatpush3.xpose.msk.msra.mxu1 %vm184_vm2, %v352_v3  ;;  %4650 = vmatprep.mubr.msk.f32.mxu1 %vm5154_vm3, %v5153_v41 }
 0x237   :  { %4653 = vmatprep.subr.mxu1 %v5153_v41 }
 0x239   :  { %4651 = vmatmul.mubr.msk.f32.vlgmr.msra.gmra.mxu1 %vm184_vm2, %v447_v7 }
 0x23a   :  { %4654 = vmatpush3.xpose.msk.msra.mxu1 %vm184_vm2, %v347_v0  ;;  %4655 = vmatprep.mubr.msk.f32.mxu1 %vm5154_vm3, %v5153_v41 }
 0x23b   :  { %4658 = vmatprep.subr.mxu1 %v5153_v41 }
 0x23d   :  { %4656 = vmatmul.mubr.msk.f32.vlgmr.msra.gmra.mxu1 %vm184_vm2, %v448_v9 }
 0x23e   :  { %4659 = vmatpush3.xpose.msk.msra.mxu1 %vm184_vm2, %v352_v3  ;;  %4660 = vmatprep.mubr.msk.f32.mxu1 %vm5154_vm3, %v5153_v41 }
 0x23f   :  { %4663 = vmatprep.subr.mxu1 %v5153_v41 }
 0x241   :  { %4661 = vmatmul.mubr.msk.f32.vlgmr.msra.gmra.mxu1 %vm184_vm2, %v449_v10 }
 0x242   :  { %4664 = vmatpush3.xpose.msk.msra.mxu1 %vm184_vm2, %v347_v0  ;;  %4665 = vmatprep.mubr.msk.f32.mxu1 %vm5154_vm3, %v5153_v41 }
 0x243   :  { %4668 = vmatprep.subr.mxu1 %v5153_v41 }
 0x245   :  { %4666 = vmatmul.mubr.msk.f32.vlgmr.msra.gmra.mxu1 %vm184_vm2, %v450_v12 }
 0x246   :  { %4669 = vmatpush3.xpose.msk.msra.mxu1 %vm184_vm2, %v352_v3  ;;  %4670 = vmatprep.mubr.msk.f32.mxu1 %vm5154_vm3, %v5153_v41 }
 0x247   :  { %4678 = vmatprep.subr.mxu1 %v5153_v41 }
 0x249   :  { %4671 = vmatmul.mubr.msk.f32.vlgmr.msra.gmra.mxu1 %vm184_vm2, %v451_v14 }
 0x24a   :  { %4679 = vmatpush3.msra.mxu1 %v453_v15  ;;  %4680 = vmatprep.mubr.msk.f32.mxu1 %vm5154_vm3, %v5153_v41 }
 0x24b   :  { %4688 = vmatprep.subr.mxu1 %v5153_v41 }
 0x2ed   :  { %v532_v16 = vpop.f32.mrf.mxu1 }
 0x2ee   :  { %v1050_v17 = vmul.f32 0.25, %v532_v16 }
 0x2ef   :  { %v4637_v18 = vpop.f32.mrf.mxu1 }
 0x2f0   :  { %v1059_v19 = vsel %vm1058_vm14, %v1050_v17, -inf }
 0x2f1   :  { %1060 = vmax.xlane.f32.xlu1 %v1059_v19  ;;  %v608_v20 = vpop.f32.mrf.mxu1 }
 0x2f2   :  { %v1051_v21 = vmul.f32 0.25, %v608_v20 }
 0x2f3   :  { %v4642_v22 = vpop.f32.mrf.mxu1 }
 0x2f4   :  { %v1062_v23 = vsel %vm1058_vm14, %v1051_v21, -inf }
 0x2f5   :  { %1063 = vmax.xlane.f32.xlu1 %v1062_v23  ;;  %v681_v24 = vpop.f32.mrf.mxu1 }
 0x2f6   :  { %v1052_v25 = vmul.f32 0.25, %v681_v24 }
 0x2f7   :  { %v4647_v26 = vpop.f32.mrf.mxu1 }
 0x2f8   :  { %v1065_v27 = vsel %vm1058_vm14, %v1052_v25, -inf }
 0x2f9   :  { %1066 = vmax.xlane.f32.xlu0 %v1065_v27  ;;  %v754_v28 = vpop.f32.mrf.mxu1 }
 0x2fa   :  { %v1053_v29 = vmul.f32 0.25, %v754_v28 }
 0x2fb   :  { %v4652_v30 = vpop.f32.mrf.mxu1 }
 0x2fc   :  { %v1068_v31 = vsel %vm1058_vm14, %v1053_v29, -inf }
 0x2fd   :  { %1069 = vmax.xlane.f32.xlu1 %v1068_v31  ;;  %v827_v32 = vpop.f32.mrf.mxu1 }
 0x2fe   :  { %v1054_v33 = vmul.f32 0.25, %v827_v32 }
 0x2ff   :  { %v4657_v34 = vpop.f32.mrf.mxu1 }
 0x300   :  { %v1071_v35 = vsel %vm1058_vm14, %v1054_v33, -inf }
 0x301   :  { %1072 = vmax.xlane.f32.xlu1 %v1071_v35  ;;  %v900_v36 = vpop.f32.mrf.mxu1 }
 0x302   :  { %v1055_v37 = vmul.f32 0.25, %v900_v36 }
 0x303   :  { %v4662_v38 = vpop.f32.mrf.mxu1 }
 0x304   :  { %v1074_v39 = vsel %vm1058_vm14, %v1055_v37, -inf }
 0x305   :  { %1075 = vmax.xlane.f32.xlu1 %v1074_v39  ;;  %v973_v40 = vpop.f32.mrf.mxu1 }
 0x306   :  { %v1056_v44 = vmul.f32 0.25, %v973_v40  ;;  %v454_v40 = vmul.f32 %v5389_v5, %v5362_v54 }
 0x307   :  { %v4667_v45 = vpop.f32.mrf.mxu1 }
 0x308   :  { %v1077_v46 = vsel %vm1058_vm14, %v1056_v44, -inf }
 0x309   :  { %1078 = vmax.xlane.f32.xlu1 %v1077_v46  ;;  %v1046_v47 = vpop.f32.mrf.mxu1 }
 0x30a   :  { %v1057_v48 = vmul.f32 0.25, %v1046_v47  ;;  %v455_v47 = vmul.f32 %v5389_v5, %v5431_v13 }
 0x30b   :  { %v4672_v49 = vpop.f32.mrf.mxu1 }
 0x30c   :  { %v1080_v50 = vsel %vm1058_vm14, %v1057_v48, -inf }
 0x30d   :  { %1081 = vmax.xlane.f32.xlu1 %v1080_v50 }
 0x37a   :  { %v1061_v51 = vpop.xlane.xlu1 %1060 }
 0x37b   :  { %v1083_v52 = vsub.f32 %v1050_v17, %v1061_v51  ;;  %v456_v51 = vmul.f32 %v5406_v8, %v5362_v54 }
 0x37d   :  { %v1091_v53 = vmul.f32 1.442695, %v1083_v52 }
 0x37e   :  { %v1064_v56 = vpop.xlane.xlu1 %1063 }
 0x37f   :  { %5024 = vpow2.f32 %v1091_v53  ;;  %v1084_v57 = vsub.f32 %v1051_v21, %v1064_v56 }
 0x381   :  { %v1093_v58 = vmul.f32 1.442695, %v1084_v57  ;;  %v457_v57 = vmul.f32 %v5406_v8, %v5431_v13 }
 0x382   :  { %v1067_v59 = vpop.xlane.xlu0 %1066 }
 0x383   :  { %5026 = vpow2.f32 %v1093_v58  ;;  %v1085_v60 = vsub.f32 %v1052_v25, %v1067_v59 }
 0x385   :  { %v1095_v61 = vmul.f32 1.442695, %v1085_v60  ;;  %v458_v60 = vmul.f32 %v5423_v11, %v5362_v54 }
 0x386   :  { %v1070_v62 = vpop.xlane.xlu1 %1069 }
 0x387   :  { %5028 = vpow2.f32 %v1095_v61  ;;  %v1086_v63 = vsub.f32 %v1053_v29, %v1070_v62 }
 0x389   :  { %v1097_v0 = vmul.f32 1.442695, %v1086_v63  ;;  %v459_v63 = vmul.f32 %v5423_v11, %v5431_v13  ;;  %v1744_v13 = vld [vmem:[%s6010_s3 + $0x38] sm:$0xff] }
 0x38a   :  { %v1073_v1 = vpop.xlane.xlu1 %1072 }
 0x38b   :  { %5030 = vpow2.f32 %v1097_v0  ;;  %v1087_v2 = vsub.f32 %v1054_v33, %v1073_v1 }
 0x38c   :  { %v5025_v3 = vpop.eup %5024 }
 0x38d   :  { %v1099_v4 = vmul.f32 1.442695, %v1087_v2  ;;  %v1107_v6 = vsel %vm1058_vm14, %v5025_v3, 0.0 }
 0x38e   :  { %v1076_v7 = vpop.xlane.xlu1 %1075  ;;  %1108 = vadd.xlane.f32.xlu1 %v1107_v6  ;;  %v1741_v6 = vld [vmem:[%s6010_s3 + $0x20] sm:$0xff] }
 0x38f   :  { %5032 = vpow2.f32 %v1099_v4  ;;  %v1088_v9 = vsub.f32 %v1055_v37, %v1076_v7  ;;  %v1742_v4 = vld [vmem:[%s6010_s3 + $0x28] sm:$0xff]  ;;  %v1740_v7 = vld [vmem:[%s6010_s3 + $0x18] sm:$0xff] }
 0x390   :  { %v5027_v10 = vpop.eup %5026 }
 0x391   :  { %v1101_v12 = vmul.f32 1.442695, %v1088_v9  ;;  %v1110_v14 = vsel %vm1058_vm14, %v5027_v10, 0.0  ;;  %v1739_v9 = vld [vmem:[%s6010_s3 + $0x10] sm:$0xff] }
 0x392   :  { %v1079_v15 = vpop.xlane.xlu1 %1078  ;;  %1111 = vadd.xlane.f32.xlu1 %v1110_v14 }
 0x393   :  { %5034 = vpow2.f32 %v1101_v12  ;;  %v1089_v16 = vsub.f32 %v1056_v44, %v1079_v15  ;;  %v1737_v12 = vld [vmem:[%s6010_s3] sm:$0xff] }
 0x394   :  { %v5029_v17 = vpop.eup %5028 }
 0x395   :  { %v1103_v18 = vmul.f32 1.442695, %v1089_v16  ;;  %v1113_v19 = vsel %vm1058_vm14, %v5029_v17, 0.0 }
 0x396   :  { %1114 = vadd.xlane.f32.xlu1 %v1113_v19  ;;  %v1082_v20 = vpop.xlane.xlu1 %1081 }
 0x397   :  { %5036 = vpow2.f32 %v1103_v18  ;;  %v1090_v21 = vsub.f32 %v1057_v48, %v1082_v20 }
 0x398   :  { %v5031_v22 = vpop.eup %5030 }
 0x399   :  { %v1105_v23 = vmul.f32 1.442695, %v1090_v21  ;;  %v1116_v24 = vsel %vm1058_vm14, %v5031_v22, 0.0 }
 0x39a   :  { %1117 = vadd.xlane.f32.xlu0 %v1116_v24 }
 0x39b   :  { %5038 = vpow2.f32 %v1105_v23 }
 0x39c   :  { %v5033_v25 = vpop.eup %5032 }
 0x39d   :  { %v1119_v26 = vsel %vm1058_vm14, %v5033_v25, 0.0 }
 0x39e   :  { %1120 = vadd.xlane.f32.xlu1 %v1119_v26 }
 0x3a0   :  { %v5035_v27 = vpop.eup %5034 }
 0x3a1   :  { %v1122_v28 = vsel %vm1058_vm14, %v5035_v27, 0.0 }
 0x3a2   :  { %1123 = vadd.xlane.f32.xlu0 %v1122_v28 }
 0x3a4   :  { %v5459_v29 = vpop.eup %5036 }
 0x3a5   :  { %v1125_v30 = vsel %vm1058_vm14, %v5459_v29, 0.0 }
 0x3a6   :  { %1126 = vadd.xlane.f32.xlu1 %v1125_v30 }
 0x3a8   :  { %v5463_v31 = vpop.eup %5038 }
 0x3a9   :  { %v1128_v32 = vsel %vm1058_vm14, %v5463_v31, 0.0 }
 0x3aa   :  { %1129 = vadd.xlane.f32.xlu0 %v1128_v32 }
 0x417   :  { %v1109_v33 = vpop.xlane.xlu1 %1108 }
 0x418   :  { %5040 = vrcp.f32 %v1109_v33 }
 0x41b   :  { %v1112_v34 = vpop.xlane.xlu1 %1111 }
 0x41c   :  { %5042 = vrcp.f32 %v1112_v34 }
 0x41f   :  { %v1115_v35 = vpop.xlane.xlu1 %1114 }
 0x420   :  { %5044 = vrcp.f32 %v1115_v35 }
 0x423   :  { %v1118_v36 = vpop.xlane.xlu0 %1117 }
 0x424   :  { %5046 = vrcp.f32 %v1118_v36  ;;  %v4209_v36 = vld [vmem:[%s6013_s6 + $0x3] ss:$0 sm:$0xff] }
 0x425   :  { %v5041_v37 = vpop.eup %5040 }
 0x426   :  { %v1132_v38 = vmul.f32 %v5041_v37, %v5025_v3  ;;  %v1743_v3 = vld [vmem:[%s6010_s3 + $0x30] sm:$0xff] }
 0x427   :  { %v1121_v39 = vpop.xlane.xlu1 %1120 }
 0x428   :  { %5048 = vrcp.f32 %v1121_v39  ;;  %4676 = vmatmul.mubr.msk.f32.vlgmr.msra.gmra.mxu0 %vm1058_vm14, %v1132_v38 }
 0x429   :  { %v5043_v44 = vpop.eup %5042  ;;  %4684 = vmatpush3.msra.mxu0 %v454_v40  ;;  %4685 = vmatprep.mubr.msk.f32.mxu0 %vm5154_vm3, %v5153_v41 }
 0x42a   :  { %v1134_v45 = vmul.f32 %v5043_v44, %v5027_v10  ;;  %4693 = vmatprep.subr.mxu0 %v5153_v41  ;;  %v1738_v10 = vld [vmem:[%s6010_s3 + $0x8] sm:$0xff] }
 0x42b   :  { %v1124_v46 = vpop.xlane.xlu0 %1123 }
 0x42c   :  { %5050 = vrcp.f32 %v1124_v46  ;;  %4681 = vmatmul.mubr.msk.f32.vlgmr.msra.gmra.mxu1 %vm1058_vm14, %v1134_v45 }
 0x42d   :  { %v5045_v48 = vpop.eup %5044  ;;  %4689 = vmatpush3.msra.mxu1 %v455_v47  ;;  %4690 = vmatprep.mubr.msk.f32.mxu1 %vm5154_vm3, %v5153_v41 }
 0x42e   :  { %v1136_v49 = vmul.f32 %v5045_v48, %v5029_v17  ;;  %4698 = vmatprep.subr.mxu1 %v5153_v41 }
 0x42f   :  { %v1127_v50 = vpop.xlane.xlu1 %1126 }
 0x430   :  { %5052 = vrcp.f32 %v1127_v50  ;;  %4686 = vmatmul.mubr.msk.f32.vlgmr.msra.gmra.mxu0 %vm1058_vm14, %v1136_v49 }
 0x431   :  { %v5047_v52 = vpop.eup %5046  ;;  %4694 = vmatpush3.msra.mxu0 %v456_v51  ;;  %4695 = vmatprep.mubr.msk.f32.mxu0 %vm5154_vm3, %v5153_v41 }
 0x432   :  { %v1138_v53 = vmul.f32 %v5047_v52, %v5031_v22  ;;  %4703 = vmatprep.subr.mxu0 %v5153_v41 }
 0x433   :  { %v1130_v56 = vpop.xlane.xlu0 %1129 }
 0x434   :  { %5054 = vrcp.f32 %v1130_v56  ;;  %4691 = vmatmul.mubr.msk.f32.vlgmr.msra.gmra.mxu1 %vm1058_vm14, %v1138_v53 }
 0x435   :  { %v5049_v58 = vpop.eup %5048  ;;  %4699 = vmatpush3.msra.mxu1 %v457_v57  ;;  %4700 = vmatprep.mubr.msk.f32.mxu1 %vm5154_vm3, %v5153_v41 }
 0x436   :  { %v1140_v59 = vmul.f32 %v5049_v58, %v5033_v25  ;;  %4708 = vmatprep.subr.mxu1 %v5153_v41  ;;  %v1881_v58 = vld [vmem:[#allocation2 + $0x38] sm:$0xff] }
 0x438   :  { %4696 = vmatmul.mubr.msk.f32.vlgmr.msra.gmra.mxu0 %vm1058_vm14, %v1140_v59  ;;  %v1880_v59 = vld [vmem:[#allocation2 + $0x30] sm:$0xff] }
 0x439   :  { %v5051_v61 = vpop.eup %5050  ;;  %4704 = vmatpush3.msra.mxu0 %v458_v60  ;;  %4705 = vmatprep.mubr.msk.f32.mxu0 %vm5154_vm3, %v5153_v41  ;;  %v1879_v60 = vld [vmem:[#allocation2 + $0x28] sm:$0xff] }
 0x43a   :  { %v1142_v62 = vmul.f32 %v5051_v61, %v5035_v27  ;;  %4713 = vmatprep.subr.mxu0 %v1744_v13  ;;  %v1878_v61 = vld [vmem:[#allocation2 + $0x20] sm:$0xff] }
 0x43c   :  { %4701 = vmatmul.mubr.msk.f32.vlgmr.msra.gmra.mxu1 %vm1058_vm14, %v1142_v62  ;;  %v1877_v62 = vld [vmem:[#allocation2 + $0x18] sm:$0xff] }
 0x43d   :  { %v5053_v0 = vpop.eup %5052  ;;  %4709 = vmatpush3.msra.mxu1 %v459_v63  ;;  %4710 = vmatprep.mubr.msk.f32.mxu1 %vm5154_vm3, %v5153_v41  ;;  %v1876_v63 = vld [vmem:[#allocation2 + $0x10] sm:$0xff] }
 0x43e   :  { %v1144_v54 = vmul.f32 %v5053_v0, %v5459_v29  ;;  %4732 = vmatprep.subr.mxu1 %v1881_v58  ;;  %v1875_v0 = vld [vmem:[#allocation2 + $0x8] sm:$0xff] }
 0x440   :  { %4706 = vmatmul.mubr.msk.f32.vlgmr.msra.gmra.mxu0 %vm1058_vm14, %v1144_v54  ;;  %v1874_v54 = vld [vmem:[#allocation2] sm:$0xff] }
 0x441   :  { %v5055_v1 = vpop.eup %5054  ;;  %4714 = vmatpush3.msra.mxu0 %v1744_v13  ;;  %v1983_v13 = vld [vmem:[%s6012_s5 + $0x68] sm:$0xff] }
 0x442   :  { %v1146_v2 = vmul.f32 %v5055_v1, %v5463_v31  ;;  %4715 = vmatprep.subr.mxu0 %v1743_v3  ;;  %v1985_v1 = vld [vmem:[%s6012_s5 + $0x78] sm:$0xff] }
 0x443   :  { %4716 = vmatpush3.msra.mxu0 %v1743_v3  ;;  %v1982_v3 = vld [vmem:[%s6012_s5 + $0x60] sm:$0xff] }
 0x444   :  { %4711 = vmatmul.mubr.msk.f32.vlgmr.msra.gmra.mxu1 %vm1058_vm14, %v1146_v2  ;;  %4717 = vmatprep.subr.mxu0 %v1742_v4  ;;  %v1984_v2 = vld [vmem:[%s6012_s5 + $0x70] sm:$0xff] }
 0x445   :  { %4718 = vmatpush3.msra.mxu0 %v1742_v4  ;;  %4733 = vmatpush3.msra.mxu1 %v1881_v58  ;;  %v1981_v4 = vld [vmem:[%s6012_s5 + $0x58] sm:$0xff] }
 0x446   :  { %4719 = vmatprep.subr.mxu0 %v1741_v6  ;;  %4734 = vmatprep.subr.mxu1 %v1880_v59 }
 0x447   :  { %4720 = vmatpush3.msra.mxu0 %v1741_v6  ;;  %4735 = vmatpush3.msra.mxu1 %v1880_v59  ;;  %v1980_v6 = vld [vmem:[%s6012_s5 + $0x50] sm:$0xff] }
 0x448   :  { %4721 = vmatprep.subr.mxu0 %v1740_v7  ;;  %4736 = vmatprep.subr.mxu1 %v1879_v60 }
 0x449   :  { %4722 = vmatpush3.msra.mxu0 %v1740_v7  ;;  %4737 = vmatpush3.msra.mxu1 %v1879_v60  ;;  %v1979_v7 = vld [vmem:[%s6012_s5 + $0x48] sm:$0xff] }
 0x44a   :  { %4723 = vmatprep.subr.mxu0 %v1739_v9  ;;  %4738 = vmatprep.subr.mxu1 %v1878_v61 }
 0x44b   :  { %4724 = vmatpush3.msra.mxu0 %v1739_v9  ;;  %4739 = vmatpush3.msra.mxu1 %v1878_v61  ;;  %v1978_v9 = vld [vmem:[%s6012_s5 + $0x40] sm:$0xff] }
 0x44c   :  { %4725 = vmatprep.subr.mxu0 %v1738_v10  ;;  %4740 = vmatprep.subr.mxu1 %v1877_v62 }
 0x44d   :  { %4726 = vmatpush3.msra.mxu0 %v1738_v10  ;;  %4741 = vmatpush3.msra.mxu1 %v1877_v62  ;;  %v1977_v10 = vld [vmem:[%s6012_s5 + $0x38] sm:$0xff] }
 0x44e   :  { %4727 = vmatprep.subr.mxu0 %v1737_v12  ;;  %4742 = vmatprep.subr.mxu1 %v1876_v63 }
 0x44f   :  { %4728 = vmatpush3.msra.mxu0 %v1737_v12  ;;  %4743 = vmatpush3.msra.mxu1 %v1876_v63  ;;  %v1976_v12 = vld [vmem:[%s6012_s5 + $0x30] sm:$0xff] }
 0x450   :  { %4744 = vmatprep.subr.mxu1 %v1875_v0  ;;  %4751 = vmatprep.subr.mxu0 %v1985_v1 }
 0x451   :  { %4745 = vmatpush3.msra.mxu1 %v1875_v0 }
 0x452   :  { %4746 = vmatprep.subr.mxu1 %v1874_v54 }
 0x453   :  { %4747 = vmatpush3.msra.mxu1 %v1874_v54  ;;  %v4227_v54 = vld [vmem:[%s6009_s2 + $0xf8] sm:$0xff] }
 0x454   :  { %4786 = vmatprep.subr.mxu1 %v4227_v54 }
 0x4e8   :  { %v1216_v14 = vpop.f32.mrf.mxu0 }
 0x4ea   :  { %v4677_v15 = vpop.f32.mrf.mxu0 }
 0x4eb   :  { %v1974_v15 = vld [vmem:[%s6012_s5 + $0x20] sm:$0xff] }
 0x4ec   :  { %v1289_v16 = vpop.f32.mrf.mxu1 }
 0x4ee   :  { %v4682_v17 = vpop.f32.mrf.mxu1 }
 0x4f0   :  { %v1362_v18 = vpop.f32.mrf.mxu0 }
 0x4f1   :  { %v1731_v25 = vadd.f32 %v1362_v18, %v1216_v14  ;;  %v1975_v14 = vld [vmem:[%s6012_s5 + $0x28] sm:$0xff] }
 0x4f2   :  { %v4687_v19 = vpop.f32.mrf.mxu0 }
 0x4f4   :  { %v1435_v20 = vpop.f32.mrf.mxu1 }
 0x4f5   :  { %v1732_v29 = vadd.f32 %v1435_v20, %v1289_v16 }
 0x4f6   :  { %v4692_v21 = vpop.f32.mrf.mxu1 }
 0x4f8   :  { %v1508_v22 = vpop.f32.mrf.mxu0 }
 0x4f9   :  { %v1733_v27 = vadd.f32 %v1731_v25, %v1508_v22 }
 0x4fa   :  { %v4697_v23 = vpop.f32.mrf.mxu0 }
 0x4fb   :  { %v4212_v23 = vld [vmem:[%s6013_s6 + $0x4] ss:$0 sm:$0xff] }
 0x4fc   :  { %v1581_v24 = vpop.f32.mrf.mxu1 }
 0x4fd   :  { %v1734_v32 = vadd.f32 %v1732_v29, %v1581_v24 }
 0x4fe   :  { %v4702_v26 = vpop.f32.mrf.mxu1 }
 0x500   :  { %v1654_v28 = vpop.f32.mrf.mxu0 }
 0x501   :  { %v1735_v30 = vadd.f32 %v1733_v27, %v1654_v28  ;;  %v4213_v28 = vld [vmem:[%s6013_s6 + $0x5] ss:$0 sm:$0xff] }
 0x502   :  { %v4707_v31 = vpop.f32.mrf.mxu0 }
 0x503   :  { %4729 = vmatprep.mubr.msk.f32.mxu0 %vm184_vm2, %v1735_v30 }
 0x504   :  { %v1727_v33 = vpop.f32.mrf.mxu1 }
 0x505   :  { %v1736_v34 = vadd.f32 %v1734_v32, %v1727_v33  ;;  %v1973_v32 = vld [vmem:[%s6012_s5 + $0x18] sm:$0xff]  ;;  %v1972_v33 = vld [vmem:[%s6012_s5 + $0x10] sm:$0xff] }
 0x506   :  { %v4712_v35 = vpop.f32.mrf.mxu1 }
 0x507   :  { %4730 = vmatmul.mubr.msk.f32.vlgmr.msra.gmra.mxu0 %vm184_vm2, %v1736_v34  ;;  %v1971_v34 = vld [vmem:[%s6012_s5 + $0x8] sm:$0xff]  ;;  %v1970_v35 = vld [vmem:[%s6012_s5] sm:$0xff] }
 0x508   :  { %4752 = vmatpush3.msra.mxu0 %v1985_v1  ;;  %v4249_v1 = vld [vmem:[%s6009_s2 + $0x178] sm:$0xff] }
 0x509   :  { %4753 = vmatprep.subr.mxu0 %v1984_v2 }
 0x50a   :  { %4754 = vmatpush3.msra.mxu0 %v1984_v2  ;;  %v4226_v2 = vld [vmem:[%s6009_s2 + $0xf0] sm:$0xff] }
 0x50b   :  { %4755 = vmatprep.subr.mxu0 %v1983_v13 }
 0x50c   :  { %4756 = vmatpush3.msra.mxu0 %v1983_v13  ;;  %v4248_v13 = vld [vmem:[%s6009_s2 + $0x170] sm:$0xff] }
 0x50d   :  { %4757 = vmatprep.subr.mxu0 %v1982_v3 }
 0x50e   :  { %4758 = vmatpush3.msra.mxu0 %v1982_v3  ;;  %v4225_v3 = vld [vmem:[%s6009_s2 + $0xe8] sm:$0xff] }
 0x50f   :  { %4759 = vmatprep.subr.mxu0 %v1981_v4 }
 0x510   :  { %4760 = vmatpush3.msra.mxu0 %v1981_v4  ;;  %v4247_v4 = vld [vmem:[%s6009_s2 + $0x168] sm:$0xff] }
 0x511   :  { %4761 = vmatprep.subr.mxu0 %v1980_v6 }
 0x512   :  { %4762 = vmatpush3.msra.mxu0 %v1980_v6  ;;  %v4224_v6 = vld [vmem:[%s6009_s2 + $0xe0] sm:$0xff] }
 0x513   :  { %4763 = vmatprep.subr.mxu0 %v1979_v7 }
 0x514   :  { %4764 = vmatpush3.msra.mxu0 %v1979_v7  ;;  %v4246_v7 = vld [vmem:[%s6009_s2 + $0x160] sm:$0xff] }
 0x515   :  { %4765 = vmatprep.subr.mxu0 %v1978_v9 }
 0x516   :  { %4766 = vmatpush3.msra.mxu0 %v1978_v9  ;;  %v4223_v9 = vld [vmem:[%s6009_s2 + $0xd8] sm:$0xff] }
 0x517   :  { %4767 = vmatprep.subr.mxu0 %v1977_v10 }
 0x518   :  { %4768 = vmatpush3.msra.mxu0 %v1977_v10  ;;  %v4245_v10 = vld [vmem:[%s6009_s2 + $0x158] sm:$0xff] }
 0x519   :  { %4769 = vmatprep.subr.mxu0 %v1976_v12 }
 0x51a   :  { %4770 = vmatpush3.msra.mxu0 %v1976_v12  ;;  %v4222_v12 = vld [vmem:[%s6009_s2 + $0xd0] sm:$0xff] }
 0x51b   :  { %4771 = vmatprep.subr.mxu0 %v1975_v14 }
 0x51c   :  { %4772 = vmatpush3.msra.mxu0 %v1975_v14  ;;  %v4244_v14 = vld [vmem:[%s6009_s2 + $0x150] sm:$0xff] }
 0x51d   :  { %4773 = vmatprep.subr.mxu0 %v1974_v15 }
 0x51e   :  { %4774 = vmatpush3.msra.mxu0 %v1974_v15  ;;  %v4221_v15 = vld [vmem:[%s6009_s2 + $0xc8] sm:$0xff] }
 0x51f   :  { %4775 = vmatprep.subr.mxu0 %v1973_v32 }
 0x520   :  { %4776 = vmatpush3.msra.mxu0 %v1973_v32  ;;  %v4219_v32 = vld [vmem:[%s6013_s6 + $0x9] ss:$0 sm:$0xff] }
 0x521   :  { %4777 = vmatprep.subr.mxu0 %v1972_v33 }
 0x522   :  { %4778 = vmatpush3.msra.mxu0 %v1972_v33 }
 0x523   :  { %4779 = vmatprep.subr.mxu0 %v1971_v34 }
 0x524   :  { %4780 = vmatpush3.msra.mxu0 %v1971_v34 }
 0x525   :  { %4781 = vmatprep.subr.mxu0 %v1970_v35 }
 0x526   :  { %4782 = vmatpush3.msra.mxu0 %v1970_v35 }
 0x527   :  { %4824 = vmatprep.subr.mxu0 %v4249_v1 }
 0x5c7   :  { %v4731_v37 = vpop.f32.mrf.mxu0 }
 0x5c8   :  { %v1828_v38 = vadd.f32 %v4731_v37, %v4209_v36 }
 0x5c9   :  { %v1822_v39 = vpop.f32.mrf.mxu0 }
 0x5ca   :  { %v1823_v40 = vadd.f32 %v4209_v36, %v1822_v39  ;;  %v1832_v44 = vadd.f32 %v5314_v42, %v1828_v38  ;;  %v4214_v36 = vld [vmem:[%s6013_s6 + $0x6] ss:$0 sm:$0xff] }
 0x5cc   :  { %v1838_v45 = vsel %vm184_vm2, %v1832_v44, 0.0  ;;  %v1831_v46 = vadd.f32 %v1823_v40, %v5316_v43 }
 0x5cd   :  { %1839 = vadd.xlane.f32.xlu0 %v1838_v45 }
 0x5ce   :  { %v1835_v47 = vsel %vm184_vm2, %v1831_v46, 0.0 }
 0x5cf   :  { %1836 = vadd.xlane.f32.xlu1 %v1835_v47 }
 0x656   :  { %v1840_v48 = vpop.xlane.xlu0 %1839 }
 0x657   :  { %v1843_v49 = vmul.f32 0.015625, %v1840_v48 }
 0x658   :  { %v1837_v50 = vpop.xlane.xlu1 %1836 }
 0x659   :  { %v5538_v51 = vsub.f32 %v1832_v44, %v1843_v49  ;;  %v1842_v52 = vmul.f32 0.015625, %v1837_v50 }
 0x65b   :  { %v5540_v53 = vsub.f32 %v1831_v46, %v1842_v52  ;;  %v1847_v56 = vmul.f32 %v5538_v51, %v5538_v51  ;;  %v4217_v46 = vld [vmem:[%s6013_s6 + $0x7] ss:$0 sm:$0xff] }
 0x65d   :  { %v1851_v42 = vsel %vm184_vm2, %v1847_v56, 0.0  ;;  %v1846_v43 = vmul.f32 %v5540_v53, %v5540_v53 }
 0x65e   :  { %1852 = vadd.xlane.f32.xlu0 %v1851_v42 }
 0x65f   :  { %v1848_v57 = vsel %vm184_vm2, %v1846_v43, 0.0 }
 0x660   :  { %1849 = vadd.xlane.f32.xlu1 %v1848_v57 }
 0x6e7   :  { %v1853_v16 = vpop.xlane.xlu0 %1852 }
 0x6e8   :  { %v1855_v17 = vmul.f32 0.015625, %v1853_v16  ;;  %v4243_v16 = vld [vmem:[%s6009_s2 + $0x148] sm:$0xff] }
 0x6e9   :  { %v1850_v18 = vpop.xlane.xlu1 %1849 }
 0x6ea   :  { %v1857_v19 = vadd.f32 1e-05, %v1855_v17  ;;  %v1854_v20 = vmul.f32 0.015625, %v1850_v18  ;;  %v4220_v17 = vld [vmem:[%s6009_s2 + $0xc0] sm:$0xff] }
 0x6eb   :  { %v4242_v18 = vld [vmem:[%s6009_s2 + $0x140] sm:$0xff] }
 0x6ec   :  { %5056 = vrsqrt.f32 %v1857_v19  ;;  %v1856_v21 = vadd.f32 1e-05, %v1854_v20  ;;  %v4238_v19 = vld [vmem:[%s6009_s2 + $0x138] sm:$0xff] }
 0x6ee   :  { %5058 = vrsqrt.f32 %v1856_v21 }
 0x6f9   :  { %v5057_v22 = vpop.eup %5056 }
 0x6fa   :  { %v1861_v24 = vmul.f32 %v5057_v22, %v5538_v51 }
 0x6fb   :  { %v5059_v25 = vpop.eup %5058 }
 0x6fc   :  { %v1860_v26 = vmul.f32 %v5059_v25, %v5540_v53  ;;  %v1867_v27 = vmul.f32 %v4212_v23, %v1861_v24 }
 0x6fe   :  { %v1866_v29 = vmul.f32 %v4212_v23, %v1860_v26  ;;  %v1873_v31 = vadd.f32 %v4213_v28, %v1867_v27  ;;  %v4218_v27 = vld [vmem:[%s6013_s6 + $0x8] ss:$0 sm:$0xff] }
 0x700   :  { %v1872_v30 = vadd.f32 %v4213_v28, %v1866_v29 }
 0x702   :  { %4748 = vmatprep.mubr.msk.f32.mxu1 %vm184_vm2, %v1872_v30 }
 0x703   :  { %4749 = vmatmul.mubr.msk.f32.vlgmr.msra.gmra.mxu1 %vm184_vm2, %v1873_v31 }
 0x704   :  { %4787 = vmatpush3.msra.mxu1 %v4227_v54 }
 0x705   :  { %4788 = vmatprep.subr.mxu1 %v4226_v2 }
 0x706   :  { %4789 = vmatpush3.msra.mxu1 %v4226_v2 }
 0x707   :  { %4790 = vmatprep.subr.mxu1 %v4225_v3 }
 0x708   :  { %4791 = vmatpush3.msra.mxu1 %v4225_v3 }
 0x709   :  { %4792 = vmatprep.subr.mxu1 %v4224_v6 }
 0x70a   :  { %4793 = vmatpush3.msra.mxu1 %v4224_v6 }
 0x70b   :  { %4794 = vmatprep.subr.mxu1 %v4223_v9 }
 0x70c   :  { %4795 = vmatpush3.msra.mxu1 %v4223_v9 }
 0x70d   :  { %4796 = vmatprep.subr.mxu1 %v4222_v12 }
 0x70e   :  { %4797 = vmatpush3.msra.mxu1 %v4222_v12 }
 0x70f   :  { %4798 = vmatprep.subr.mxu1 %v4221_v15 }
 0x710   :  { %4799 = vmatpush3.msra.mxu1 %v4221_v15 }
 0x711   :  { %4800 = vmatprep.subr.mxu1 %v4220_v17 }
 0x712   :  { %4801 = vmatpush3.msra.mxu1 %v4220_v17 }
 0x713   :  { %4805 = vmatprep.subr.mxu1 %v4238_v19 }
 0x7c3   :  { %v4750_v37 = vpop.f32.mrf.mxu1 }
 0x7c4   :  { %v1965_v38 = vadd.f32 %v4750_v37, %v4214_v36  ;;  %v4236_v37 = vld [vmem:[%s6009_s2 + $0x128] sm:$0xff] }
 0x7c5   :  { %v1959_v39 = vpop.f32.mrf.mxu1 }
 0x7c6   :  { %v1960_v40 = vadd.f32 %v4214_v36, %v1959_v39  ;;  %v1969_v45 = vmax.f32 %v1965_v38, 0.0  ;;  %v4237_v36 = vld [vmem:[%s6009_s2 + $0x130] sm:$0xff]  ;;  %v4235_v38 = vld [vmem:[%s6009_s2 + $0x120] sm:$0xff]  ;;  %v4234_v39 = vld [vmem:[%s6009_s2 + $0x118] sm:$0xff] }
 0x7c8   :  { %v1968_v44 = vmax.f32 %v1960_v40, 0.0  ;;  %v4233_v40 = vld [vmem:[%s6009_s2 + $0x110] sm:$0xff] }
 0x7ca   :  { %4783 = vmatprep.mubr.f32.mxu0 %v1968_v44  ;;  %v4232_v44 = vld [vmem:[%s6009_s2 + $0x108] sm:$0xff] }
 0x7cb   :  { %4784 = vmatmul.mubr.f32.vlgmr.msra.gmra.mxu0 %v1969_v45  ;;  %v4231_v45 = vld [vmem:[%s6009_s2 + $0x100] sm:$0xff] }
 0x7cc   :  { %4825 = vmatpush3.msra.mxu0 %v4249_v1 }
 0x7cd   :  { %4826 = vmatprep.subr.mxu0 %v4248_v13 }
 0x7ce   :  { %4827 = vmatpush3.msra.mxu0 %v4248_v13 }
 0x7cf   :  { %4828 = vmatprep.subr.mxu0 %v4247_v4 }
 0x7d0   :  { %4829 = vmatpush3.msra.mxu0 %v4247_v4 }
 0x7d1   :  { %4830 = vmatprep.subr.mxu0 %v4246_v7 }
 0x7d2   :  { %4831 = vmatpush3.msra.mxu0 %v4246_v7 }
 0x7d3   :  { %4832 = vmatprep.subr.mxu0 %v4245_v10 }
 0x7d4   :  { %4833 = vmatpush3.msra.mxu0 %v4245_v10 }
 0x7d5   :  { %4834 = vmatprep.subr.mxu0 %v4244_v14 }
 0x7d6   :  { %4835 = vmatpush3.msra.mxu0 %v4244_v14 }
 0x7d7   :  { %4836 = vmatprep.subr.mxu0 %v4243_v16 }
 0x7d8   :  { %4837 = vmatpush3.msra.mxu0 %v4243_v16 }
 0x7d9   :  { %4838 = vmatprep.subr.mxu0 %v4242_v18 }
 0x7da   :  { %4839 = vmatpush3.msra.mxu0 %v4242_v18 }
 0x7db   :  { %4863 = vmatprep.subr.mxu0 %v5153_v41 }
 0x88b   :  { %v4785_v47 = vpop.f32.mrf.mxu0 }
 0x88c   :  { %v2063_v48 = vadd.f32 %v4785_v47, %v4217_v46 }
 0x88d   :  { %v2057_v49 = vpop.f32.mrf.mxu0 }
 0x88e   :  { %v2058_v50 = vadd.f32 %v4217_v46, %v2057_v49  ;;  %v2067_v51 = vadd.f32 %v2063_v48, %v1873_v31 }
 0x890   :  { %v2073_v52 = vsel %vm184_vm2, %v2067_v51, 0.0  ;;  %v2066_v53 = vadd.f32 %v2058_v50, %v1872_v30  ;;  %v4228_v50 = vld [vmem:[%s6013_s6 + $0xa] ss:$0 sm:$0xff] }
 0x891   :  { %2074 = vadd.xlane.f32.xlu0 %v2073_v52  ;;  %v4239_v52 = vld [vmem:[%s6013_s6 + $0xb] ss:$0 sm:$0xff] }
 0x892   :  { %v2070_v56 = vsel %vm184_vm2, %v2066_v53, 0.0 }
 0x893   :  { %2071 = vadd.xlane.f32.xlu1 %v2070_v56 }
 0x91a   :  { %v2075_v42 = vpop.xlane.xlu0 %2074 }
 0x91b   :  { %v2077_v43 = vmul.f32 0.015625, %v2075_v42 }
 0x91c   :  { %v2072_v57 = vpop.xlane.xlu1 %2071 }
 0x91d   :  { %v5614_v58 = vsub.f32 %v2067_v51, %v2077_v43  ;;  %v2076_v59 = vmul.f32 0.015625, %v2072_v57  ;;  %v4250_v57 = vld [vmem:[%s6013_s6 + $0xc] ss:$0 sm:$0xff] }
 0x91f   :  { %v5616_v60 = vsub.f32 %v2066_v53, %v2076_v59  ;;  %v2081_v61 = vmul.f32 %v5614_v58, %v5614_v58 }
 0x921   :  { %v2085_v62 = vsel %vm184_vm2, %v2081_v61, 0.0  ;;  %v2080_v63 = vmul.f32 %v5616_v60, %v5616_v60 }
 0x922   :  { %2086 = vadd.xlane.f32.xlu0 %v2085_v62 }
 0x923   :  { %v2082_v0 = vsel %vm184_vm2, %v2080_v63, 0.0 }
 0x924   :  { %2083 = vadd.xlane.f32.xlu1 %v2082_v0 }
 0x9ab   :  { %v2087_v20 = vpop.xlane.xlu0 %2086 }
 0x9ac   :  { %v2089_v21 = vmul.f32 0.015625, %v2087_v20 }
 0x9ad   :  { %v2084_v22 = vpop.xlane.xlu1 %2083 }
 0x9ae   :  { %v2091_v23 = vadd.f32 1e-05, %v2089_v21  ;;  %v2088_v24 = vmul.f32 0.015625, %v2084_v22 }
 0x9b0   :  { %5060 = vrsqrt.f32 %v2091_v23  ;;  %v2090_v25 = vadd.f32 1e-05, %v2088_v24 }
 0x9b2   :  { %5062 = vrsqrt.f32 %v2090_v25 }
 0x9bd   :  { %v5061_v26 = vpop.eup %5060 }
 0x9be   :  { %v2095_v28 = vmul.f32 %v5061_v26, %v5614_v58 }
 0x9bf   :  { %v5063_v29 = vpop.eup %5062 }
 0x9c0   :  { %v2094_v30 = vmul.f32 %v5063_v29, %v5616_v60  ;;  %v2101_v31 = vmul.f32 %v4218_v27, %v2095_v28 }
 0x9c2   :  { %v2100_v33 = vmul.f32 %v4218_v27, %v2094_v30  ;;  %v5686_v35 = vadd.f32 %v4219_v32, %v2101_v31 }
 0x9c4   :  { %v5684_v34 = vadd.f32 %v4219_v32, %v2100_v33 }
 0x9c6   :  { %4802 = vmatprep.mubr.msk.f32.mxu1 %vm184_vm2, %v5684_v34  ;;  %4840 = vmatprep.mubr.msk.f32.mxu0 %vm184_vm2, %v5684_v34 }
 0x9c7   :  { %4803 = vmatmul.mubr.msk.f32.vlgmr.msra.gmra.mxu1 %vm184_vm2, %v5686_v35  ;;  %4841 = vmatmul.mubr.msk.f32.vlgmr.msra.gmra.mxu0 %vm184_vm2, %v5686_v35 }
 0x9c8   :  { %4806 = vmatpush3.msra.mxu1 %v4238_v19  ;;  %4821 = vmatprep.mubr.msk.f32.mxu1 %vm184_vm2, %v5684_v34 }
 0x9c9   :  { %4807 = vmatprep.subr.mxu1 %v4237_v36  ;;  %4865 = vmatprep.mubr.msk.f32.mxu0 %vm5154_vm3, %v5153_v41 }
 0x9ca   :  { %4808 = vmatpush3.msra.mxu1 %v4237_v36 }
 0x9cb   :  { %4809 = vmatprep.subr.mxu1 %v4236_v37 }
 0x9cc   :  { %4810 = vmatpush3.msra.mxu1 %v4236_v37 }
 0x9cd   :  { %4811 = vmatprep.subr.mxu1 %v4235_v38 }
 0x9ce   :  { %4812 = vmatpush3.msra.mxu1 %v4235_v38 }
 0x9cf   :  { %4813 = vmatprep.subr.mxu1 %v4234_v39 }
 0x9d0   :  { %4814 = vmatpush3.msra.mxu1 %v4234_v39 }
 0x9d1   :  { %4815 = vmatprep.subr.mxu1 %v4233_v40 }
 0x9d2   :  { %4816 = vmatpush3.msra.mxu1 %v4233_v40 }
 0x9d3   :  { %4817 = vmatprep.subr.mxu1 %v4232_v44 }
 0x9d4   :  { %4818 = vmatpush3.msra.mxu1 %v4232_v44 }
 0x9d5   :  { %4819 = vmatprep.subr.mxu1 %v4231_v45 }
 0x9d6   :  { %4820 = vmatpush3.msra.mxu1 %v4231_v45 }
 0x9d7   :  { %4822 = vmatmul.mubr.msk.f32.vlgmr.msra.gmra.mxu1 %vm184_vm2, %v5686_v35  ;;  %4843 = vmatprep.subr.mxu1 %v5153_v41 }
 0x9d8   :  { %4845 = vmatprep.mubr.msk.f32.mxu1 %vm5154_vm3, %v5153_v41 }
 0xa87   :  { %v4804_v46 = vpop.f32.mrf.mxu1  ;;  %v4842_v48 = vpop.f32.mrf.mxu0 }
 0xa88   :  { %v2200_v43 = vadd.f32 %v4804_v46, %v4228_v50  ;;  %v5779_v13 = vadd.f32 %v4842_v48, %v4250_v57 }
 0xa89   :  { %v2194_v47 = vpop.f32.mrf.mxu1  ;;  %v2372_v42 = vpop.f32.mrf.mxu0 }
 0xa8a   :  { %v2195_v51 = vadd.f32 %v4228_v50, %v2194_v47  ;;  %v5741_v60 = vadd.f32 %v4250_v57, %v2372_v42  ;;  %v2382_v62 = vmul.f32 %v5365_v55, %v2200_v43  ;;  %v2384_v1 = vmul.f32 %v5389_v5, %v2200_v43 }
 0xa8b   :  { %v2386_v2 = vmul.f32 %v5406_v8, %v2200_v43  ;;  %v2388_v3 = vmul.f32 %v5423_v11, %v2200_v43  ;;  %v2390_v4 = vmul.f32 %v5365_v55, %v5779_v13 }
 0xa8c   :  { %v2381_v58 = vmul.f32 %v5365_v55, %v2195_v51  ;;  %v2385_v59 = vmul.f32 %v5406_v8, %v2195_v51  ;;  %v2387_v63 = vmul.f32 %v5423_v11, %v2195_v51  ;;  %v2389_v0 = vmul.f32 %v5365_v55, %v5741_v60 }
 0xa8d   :  { %v2383_v54 = vmul.f32 %v5389_v5, %v2195_v51 }
 0xa97   :  { %v4823_v49 = vpop.f32.mrf.mxu1 }
 0xa98   :  { %v2289_v61 = vadd.f32 %v4823_v49, %v4239_v52 }
 0xa99   :  { %v2283_v53 = vpop.f32.mrf.mxu1 }
 0xa9a   :  { %v2284_v56 = vadd.f32 %v4239_v52, %v2283_v53 }
 0xa9c   :  { %4844 = vmatpush3.xpose.msk.msra.mxu1 %vm184_vm2, %v2284_v56  ;;  %4864 = vmatpush3.xpose.msk.msra.mxu0 %vm184_vm2, %v2284_v56 }
 0xa9d   :  { %4848 = vmatprep.subr.mxu1 %v5153_v41  ;;  %4873 = vmatprep.subr.mxu0 %v5153_v41 }
 0xa9f   :  { %4846 = vmatmul.mubr.msk.f32.vlgmr.msra.gmra.mxu1 %vm184_vm2, %v2381_v58  ;;  %4866 = vmatmul.mubr.msk.f32.vlgmr.msra.gmra.mxu0 %vm184_vm2, %v2385_v59 }
 0xaa0   :  { %4849 = vmatpush3.xpose.msk.msra.mxu1 %vm184_vm2, %v2289_v61  ;;  %4874 = vmatpush3.xpose.msk.msra.mxu0 %vm184_vm2, %v2284_v56 }
 0xaa1   :  { %4850 = vmatprep.mubr.msk.f32.mxu1 %vm5154_vm3, %v5153_v41  ;;  %4875 = vmatprep.mubr.msk.f32.mxu0 %vm5154_vm3, %v5153_v41 }
 0xaa2   :  { %4853 = vmatprep.subr.mxu1 %v5153_v41  ;;  %4883 = vmatprep.subr.mxu0 %v5153_v41 }
 0xaa3   :  { %4851 = vmatmul.mubr.msk.f32.vlgmr.msra.gmra.mxu1 %vm184_vm2, %v2382_v62  ;;  %4876 = vmatmul.mubr.msk.f32.vlgmr.msra.gmra.mxu0 %vm184_vm2, %v2387_v63 }
 0xaa4   :  { %4854 = vmatpush3.xpose.msk.msra.mxu1 %vm184_vm2, %v2284_v56  ;;  %4884 = vmatpush3.msra.mxu0 %v2389_v0 }
 0xaa5   :  { %4855 = vmatprep.mubr.msk.f32.mxu1 %vm5154_vm3, %v5153_v41  ;;  %4858 = vmatprep.subr.mxu1 %v5153_v41 }
 0xaa6   :  { %4885 = vmatprep.mubr.msk.f32.mxu0 %vm5154_vm3, %v5153_v41  ;;  %4893 = vmatprep.subr.mxu0 %v5153_v41 }
 0xaa7   :  { %4856 = vmatmul.mubr.msk.f32.vlgmr.msra.gmra.mxu1 %vm184_vm2, %v2383_v54 }
 0xaa8   :  { %4859 = vmatpush3.xpose.msk.msra.mxu1 %vm184_vm2, %v2289_v61  ;;  %4860 = vmatprep.mubr.msk.f32.mxu1 %vm5154_vm3, %v5153_v41 }
 0xaa9   :  { %4868 = vmatprep.subr.mxu1 %v5153_v41 }
 0xaab   :  { %4861 = vmatmul.mubr.msk.f32.vlgmr.msra.gmra.mxu1 %vm184_vm2, %v2384_v1 }
 0xaac   :  { %4869 = vmatpush3.xpose.msk.msra.mxu1 %vm184_vm2, %v2289_v61  ;;  %4870 = vmatprep.mubr.msk.f32.mxu1 %vm5154_vm3, %v5153_v41 }
 0xaad   :  { %4878 = vmatprep.subr.mxu1 %v5153_v41 }
 0xaaf   :  { %4871 = vmatmul.mubr.msk.f32.vlgmr.msra.gmra.mxu1 %vm184_vm2, %v2386_v2 }
 0xab0   :  { %4879 = vmatpush3.xpose.msk.msra.mxu1 %vm184_vm2, %v2289_v61  ;;  %4880 = vmatprep.mubr.msk.f32.mxu1 %vm5154_vm3, %v5153_v41 }
 0xab1   :  { %4888 = vmatprep.subr.mxu1 %v5153_v41 }
 0xab3   :  { %4881 = vmatmul.mubr.msk.f32.vlgmr.msra.gmra.mxu1 %vm184_vm2, %v2388_v3 }
 0xab4   :  { %4889 = vmatpush3.msra.mxu1 %v2390_v4  ;;  %4890 = vmatprep.mubr.msk.f32.mxu1 %vm5154_vm3, %v5153_v41 }
 0xab5   :  { %4898 = vmatprep.subr.mxu1 %v5153_v41 }
 0xb5f   :  { %v2469_v6 = vpop.f32.mrf.mxu1  ;;  %v2764_v7 = vpop.f32.mrf.mxu0 }
 0xb60   :  { %v2987_v9 = vmul.f32 0.25, %v2469_v6  ;;  %v2991_v23 = vmul.f32 0.25, %v2764_v7 }
 0xb61   :  { %v4847_v10 = vpop.f32.mrf.mxu1  ;;  %v4867_v12 = vpop.f32.mrf.mxu0 }
 0xb62   :  { %v2995_v14 = vsel %vm1058_vm14, %v2987_v9, -inf  ;;  %v3007_v29 = vsel %vm1058_vm14, %v2991_v23, -inf }
 0xb63   :  { %v2910_v15 = vpop.f32.mrf.mxu0  ;;  %2996 = vmax.xlane.f32.xlu1 %v2995_v14  ;;  %v2545_v16 = vpop.f32.mrf.mxu1 }
 0xb64   :  { %v2988_v17 = vmul.f32 0.25, %v2545_v16  ;;  %v2993_v28 = vmul.f32 0.25, %v2910_v15 }
 0xb65   :  { %v4852_v55 = vpop.f32.mrf.mxu1  ;;  %v4877_v18 = vpop.f32.mrf.mxu0 }
 0xb66   :  { %v2998_v19 = vsel %vm1058_vm14, %v2988_v17, -inf  ;;  %v3013_v36 = vsel %vm1058_vm14, %v2993_v28, -inf }
 0xb67   :  { %2999 = vmax.xlane.f32.xlu0 %v2998_v19  ;;  %v2618_v20 = vpop.f32.mrf.mxu1 }
 0xb68   :  { %v2989_v21 = vmul.f32 0.25, %v2618_v20 }
 0xb69   :  { %v4857_v22 = vpop.f32.mrf.mxu1 }
 0xb6a   :  { %v3001_v24 = vsel %vm1058_vm14, %v2989_v21, -inf }
 0xb6b   :  { %3002 = vmax.xlane.f32.xlu1 %v3001_v24  ;;  %v2691_v25 = vpop.f32.mrf.mxu1 }
 0xb6c   :  { %v2990_v26 = vmul.f32 0.25, %v2691_v25 }
 0xb6d   :  { %v4862_v27 = vpop.f32.mrf.mxu1 }
 0xb6e   :  { %v3004_v30 = vsel %vm1058_vm14, %v2990_v26, -inf }
 0xb6f   :  { %3008 = vmax.xlane.f32.xlu1 %v3007_v29  ;;  %3005 = vmax.xlane.f32.xlu0 %v3004_v30  ;;  %v2837_v31 = vpop.f32.mrf.mxu1 }
 0xb70   :  { %v2992_v32 = vmul.f32 0.25, %v2837_v31 }
 0xb71   :  { %v4872_v33 = vpop.f32.mrf.mxu1 }
 0xb72   :  { %v3010_v37 = vsel %vm1058_vm14, %v2992_v32, -inf }
 0xb73   :  { %3014 = vmax.xlane.f32.xlu1 %v3013_v36  ;;  %3011 = vmax.xlane.f32.xlu0 %v3010_v37  ;;  %v2983_v38 = vpop.f32.mrf.mxu1 }
 0xb74   :  { %v2994_v39 = vmul.f32 0.25, %v2983_v38  ;;  %v2392_v38 = vmul.f32 %v5389_v5, %v5779_v13 }
 0xb75   :  { %v4882_v40 = vpop.f32.mrf.mxu1 }
 0xb76   :  { %v3016_v44 = vsel %vm1058_vm14, %v2994_v39, -inf }
 0xb77   :  { %3017 = vmax.xlane.f32.xlu0 %v3016_v44 }
 0xbec   :  { %v2997_v45 = vpop.xlane.xlu1 %2996 }
 0xbed   :  { %v3019_v46 = vsub.f32 %v2987_v9, %v2997_v45  ;;  %v2393_v45 = vmul.f32 %v5406_v8, %v5741_v60 }
 0xbef   :  { %v3027_v47 = vmul.f32 1.442695, %v3019_v46 }
 0xbf0   :  { %v3000_v48 = vpop.xlane.xlu0 %2999 }
 0xbf1   :  { %5064 = vpow2.f32 %v3027_v47  ;;  %v3020_v49 = vsub.f32 %v2988_v17, %v3000_v48 }
 0xbf3   :  { %v3029_v50 = vmul.f32 1.442695, %v3020_v49  ;;  %v2395_v49 = vmul.f32 %v5423_v11, %v5741_v60 }
 0xbf4   :  { %v3003_v51 = vpop.xlane.xlu1 %3002 }
 0xbf5   :  { %5066 = vpow2.f32 %v3029_v50  ;;  %v3021_v52 = vsub.f32 %v2989_v21, %v3003_v51  ;;  %v2394_v50 = vmul.f32 %v5406_v8, %v5779_v13  ;;  %v2396_v8 = vmul.f32 %v5423_v11, %v5779_v13  ;;  %v4283_v11 = vld [vmem:[%s6010_s3 + $0x70] sm:$0xff]  ;;  %v4282_v13 = vld [vmem:[%s6010_s3 + $0x68] sm:$0xff] }
 0xbf7   :  { %v3031_v53 = vmul.f32 1.442695, %v3021_v52 }
 0xbf8   :  { %v3009_v56 = vpop.xlane.xlu1 %3008  ;;  %v3006_v42 = vpop.xlane.xlu0 %3005 }
 0xbf9   :  { %5068 = vpow2.f32 %v3031_v53  ;;  %v3023_v43 = vsub.f32 %v2991_v23, %v3009_v56  ;;  %v3022_v57 = vsub.f32 %v2990_v26, %v3006_v42 }
 0xbfb   :  { %v3035_v58 = vmul.f32 1.442695, %v3023_v43  ;;  %v3033_v59 = vmul.f32 1.442695, %v3022_v57  ;;  %v4284_v43 = vld [vmem:[%s6010_s3 + $0x78] sm:$0xff]  ;;  %v4281_v57 = vld [vmem:[%s6010_s3 + $0x60] sm:$0xff] }
 0xbfc   :  { %v3015_v61 = vpop.xlane.xlu1 %3014  ;;  %v3012_v62 = vpop.xlane.xlu0 %3011 }
 0xbfd   :  { %5070 = vpow2.f32 %v3035_v58  ;;  %v3025_v63 = vsub.f32 %v2993_v28, %v3015_v61  ;;  %v3024_v0 = vsub.f32 %v2992_v32, %v3012_v62  ;;  %v2391_v32 = vmul.f32 %v5389_v5, %v5741_v60  ;;  %v4280_v58 = vld [vmem:[%s6010_s3 + $0x58] sm:$0xff]  ;;  %v4278_v61 = vld [vmem:[%s6010_s3 + $0x48] sm:$0xff]  ;;  %v4277_v62 = vld [vmem:[%s6010_s3 + $0x40] sm:$0xff] }
 0xbfe   :  { %v5065_v54 = vpop.eup %5064  ;;  %5072 = vpow2.f32 %v3033_v59  ;;  %v4279_v59 = vld [vmem:[%s6010_s3 + $0x50] sm:$0xff] }
 0xbff   :  { %v3039_v1 = vmul.f32 1.442695, %v3025_v63  ;;  %v3037_v2 = vmul.f32 1.442695, %v3024_v0  ;;  %v3043_v3 = vsel %vm1058_vm14, %v5065_v54, 0.0 }
 0xc00   :  { %3044 = vadd.xlane.f32.xlu1 %v3043_v3  ;;  %v3018_v4 = vpop.xlane.xlu0 %3017 }
 0xc01   :  { %5074 = vpow2.f32 %v3039_v1  ;;  %v3026_v6 = vsub.f32 %v2994_v39, %v3018_v4 }
 0xc02   :  { %v5067_v7 = vpop.eup %5066  ;;  %5076 = vpow2.f32 %v3037_v2 }
 0xc03   :  { %v3041_v9 = vmul.f32 1.442695, %v3026_v6  ;;  %v3046_v10 = vsel %vm1058_vm14, %v5067_v7, 0.0 }
 0xc04   :  { %3047 = vadd.xlane.f32.xlu0 %v3046_v10 }
 0xc05   :  { %5078 = vpow2.f32 %v3041_v9 }
 0xc06   :  { %v5069_v12 = vpop.eup %5068 }
 0xc07   :  { %v3049_v14 = vsel %vm1058_vm14, %v5069_v12, 0.0 }
 0xc08   :  { %3050 = vadd.xlane.f32.xlu1 %v3049_v14 }
 0xc0a   :  { %v5071_v15 = vpop.eup %5070 }
 0xc0b   :  { %v5073_v16 = vpop.eup %5072  ;;  %v3055_v17 = vsel %vm1058_vm14, %v5071_v15, 0.0 }
 0xc0c   :  { %3056 = vadd.xlane.f32.xlu1 %v3055_v17  ;;  %v3052_v55 = vsel %vm1058_vm14, %v5073_v16, 0.0 }
 0xc0d   :  { %3053 = vadd.xlane.f32.xlu0 %v3052_v55 }
 0xc0e   :  { %v5075_v18 = vpop.eup %5074 }
 0xc0f   :  { %v5077_v19 = vpop.eup %5076  ;;  %v3061_v20 = vsel %vm1058_vm14, %v5075_v18, 0.0 }
 0xc10   :  { %3062 = vadd.xlane.f32.xlu1 %v3061_v20  ;;  %v3058_v21 = vsel %vm1058_vm14, %v5077_v19, 0.0 }
 0xc11   :  { %3059 = vadd.xlane.f32.xlu0 %v3058_v21 }
 0xc12   :  { %v5808_v22 = vpop.eup %5078 }
 0xc13   :  { %v3064_v23 = vsel %vm1058_vm14, %v5808_v22, 0.0 }
 0xc15   :  { %3065 = vadd.xlane.f32.xlu0 %v3064_v23  ;;  %v4285_v23 = vld [vmem:[%s6013_s6 + $0xd] ss:$0 sm:$0xff] }
 0xc89   :  { %v3045_v24 = vpop.xlane.xlu1 %3044 }
 0xc8a   :  { %5080 = vrcp.f32 %v3045_v24 }
 0xc8d   :  { %v3048_v25 = vpop.xlane.xlu0 %3047 }
 0xc8e   :  { %5082 = vrcp.f32 %v3048_v25 }
 0xc91   :  { %v3051_v26 = vpop.xlane.xlu1 %3050 }
 0xc92   :  { %5084 = vrcp.f32 %v3051_v26 }
 0xc95   :  { %v3057_v27 = vpop.xlane.xlu1 %3056 }
 0xc96   :  { %5086 = vrcp.f32 %v3057_v27  ;;  %v3054_v28 = vpop.xlane.xlu0 %3053 }
 0xc97   :  { %v5081_v29 = vpop.eup %5080  ;;  %5088 = vrcp.f32 %v3054_v28 }
 0xc98   :  { %v3068_v30 = vmul.f32 %v5081_v29, %v5065_v54 }
 0xc99   :  { %v3063_v31 = vpop.xlane.xlu1 %3062 }
 0xc9a   :  { %5090 = vrcp.f32 %v3063_v31  ;;  %v3060_v33 = vpop.xlane.xlu0 %3059  ;;  %4886 = vmatmul.mubr.msk.f32.vlgmr.msra.gmra.mxu0 %vm1058_vm14, %v3068_v30 }
 0xc9b   :  { %v5083_v36 = vpop.eup %5082  ;;  %5092 = vrcp.f32 %v3060_v33  ;;  %4894 = vmatpush3.msra.mxu0 %v2391_v32  ;;  %4895 = vmatprep.mubr.msk.f32.mxu0 %vm5154_vm3, %v5153_v41 }
 0xc9c   :  { %v3070_v37 = vmul.f32 %v5083_v36, %v5067_v7  ;;  %4903 = vmatprep.subr.mxu0 %v5153_v41 }
 0xc9e   :  { %v3066_v39 = vpop.xlane.xlu0 %3065  ;;  %4891 = vmatmul.mubr.msk.f32.vlgmr.msra.gmra.mxu1 %vm1058_vm14, %v3070_v37 }
 0xc9f   :  { %v5085_v40 = vpop.eup %5084  ;;  %5094 = vrcp.f32 %v3066_v39  ;;  %4899 = vmatpush3.msra.mxu1 %v2392_v38  ;;  %4900 = vmatprep.mubr.msk.f32.mxu1 %vm5154_vm3, %v5153_v41 }
 0xca0   :  { %v3072_v44 = vmul.f32 %v5085_v40, %v5069_v12  ;;  %4908 = vmatprep.subr.mxu1 %v5153_v41 }
 0xca2   :  { %4896 = vmatmul.mubr.msk.f32.vlgmr.msra.gmra.mxu0 %vm1058_vm14, %v3072_v44 }
 0xca3   :  { %v5087_v46 = vpop.eup %5086  ;;  %4904 = vmatpush3.msra.mxu0 %v2393_v45  ;;  %4905 = vmatprep.mubr.msk.f32.mxu0 %vm5154_vm3, %v5153_v41  ;;  %v3818_v45 = vld [vmem:[#allocation2 + $0x78] sm:$0xff] }
 0xca4   :  { %v5089_v5 = vpop.eup %5088  ;;  %4913 = vmatprep.subr.mxu0 %v5153_v41  ;;  %v3076_v47 = vmul.f32 %v5087_v46, %v5071_v15  ;;  %v3817_v46 = vld [vmem:[#allocation2 + $0x70] sm:$0xff] }
 0xca5   :  { %v3074_v48 = vmul.f32 %v5089_v5, %v5073_v16  ;;  %v3816_v5 = vld [vmem:[#allocation2 + $0x68] sm:$0xff] }
 0xca6   :  { %4906 = vmatmul.mubr.msk.f32.vlgmr.msra.gmra.mxu0 %vm1058_vm14, %v3076_v47  ;;  %v3815_v47 = vld [vmem:[#allocation2 + $0x60] sm:$0xff] }
 0xca7   :  { %v5091_v51 = vpop.eup %5090  ;;  %4901 = vmatmul.mubr.msk.f32.vlgmr.msra.gmra.mxu1 %vm1058_vm14, %v3074_v48  ;;  %4914 = vmatpush3.msra.mxu0 %v2395_v49  ;;  %v3814_v48 = vld [vmem:[#allocation2 + $0x58] sm:$0xff]  ;;  %v3813_v49 = vld [vmem:[#allocation2 + $0x50] sm:$0xff] }
 0xca8   :  { %v5093_v52 = vpop.eup %5092  ;;  %4909 = vmatpush3.msra.mxu1 %v2394_v50  ;;  %4910 = vmatprep.mubr.msk.f32.mxu1 %vm5154_vm3, %v5153_v41  ;;  %v3080_v53 = vmul.f32 %v5091_v51, %v5075_v18  ;;  %v3812_v50 = vld [vmem:[#allocation2 + $0x48] sm:$0xff]  ;;  %v3811_v51 = vld [vmem:[#allocation2 + $0x40] sm:$0xff] }
 0xca9   :  { %4915 = vmatprep.mubr.msk.f32.mxu0 %vm5154_vm3, %v5153_v41  ;;  %4918 = vmatprep.subr.mxu1 %v5153_v41  ;;  %v3078_v60 = vmul.f32 %v5093_v52, %v5077_v19  ;;  %v4308_v52 = vld [vmem:[%s6012_s5 + $0xf8] sm:$0xff] }
 0xcaa   :  { %4916 = vmatmul.mubr.msk.f32.vlgmr.msra.gmra.mxu0 %vm1058_vm14, %v3080_v53  ;;  %4923 = vmatprep.subr.mxu0 %v4284_v43  ;;  %v4307_v53 = vld [vmem:[%s6012_s5 + $0xf0] sm:$0xff] }
 0xcab   :  { %4911 = vmatmul.mubr.msk.f32.vlgmr.msra.gmra.mxu1 %vm1058_vm14, %v3078_v60  ;;  %4924 = vmatpush3.msra.mxu0 %v4284_v43  ;;  %v4306_v60 = vld [vmem:[%s6012_s5 + $0xe8] sm:$0xff] }
 0xcac   :  { %v5095_v56 = vpop.eup %5094  ;;  %4919 = vmatpush3.msra.mxu1 %v2396_v8  ;;  %4920 = vmatprep.mubr.msk.f32.mxu1 %vm5154_vm3, %v5153_v41  ;;  %v4305_v8 = vld [vmem:[%s6012_s5 + $0xe0] sm:$0xff]  ;;  %v4302_v43 = vld [vmem:[%s6012_s5 + $0xc8] sm:$0xff] }
 0xcad   :  { %v3082_v42 = vmul.f32 %v5095_v56, %v5808_v22  ;;  %4925 = vmatprep.subr.mxu0 %v4283_v11  ;;  %4942 = vmatprep.subr.mxu1 %v3818_v45  ;;  %v4304_v56 = vld [vmem:[%s6012_s5 + $0xd8] sm:$0xff] }
 0xcae   :  { %4926 = vmatpush3.msra.mxu0 %v4283_v11  ;;  %v4301_v11 = vld [vmem:[%s6012_s5 + $0xc0] sm:$0xff] }
 0xcaf   :  { %4921 = vmatmul.mubr.msk.f32.vlgmr.msra.gmra.mxu1 %vm1058_vm14, %v3082_v42  ;;  %4927 = vmatprep.subr.mxu0 %v4282_v13  ;;  %v4303_v42 = vld [vmem:[%s6012_s5 + $0xd0] sm:$0xff] }
 0xcb0   :  { %4928 = vmatpush3.msra.mxu0 %v4282_v13  ;;  %4943 = vmatpush3.msra.mxu1 %v3818_v45  ;;  %v4300_v13 = vld [vmem:[%s6012_s5 + $0xb8] sm:$0xff] }
 0xcb1   :  { %4929 = vmatprep.subr.mxu0 %v4281_v57  ;;  %4944 = vmatprep.subr.mxu1 %v3817_v46 }
 0xcb2   :  { %4930 = vmatpush3.msra.mxu0 %v4281_v57  ;;  %4945 = vmatpush3.msra.mxu1 %v3817_v46  ;;  %v4299_v57 = vld [vmem:[%s6012_s5 + $0xb0] sm:$0xff] }
 0xcb3   :  { %4931 = vmatprep.subr.mxu0 %v4280_v58  ;;  %4946 = vmatprep.subr.mxu1 %v3816_v5 }
 0xcb4   :  { %4932 = vmatpush3.msra.mxu0 %v4280_v58  ;;  %4947 = vmatpush3.msra.mxu1 %v3816_v5  ;;  %v4298_v58 = vld [vmem:[%s6012_s5 + $0xa8] sm:$0xff] }
 0xcb5   :  { %4933 = vmatprep.subr.mxu0 %v4279_v59  ;;  %4948 = vmatprep.subr.mxu1 %v3815_v47 }
 0xcb6   :  { %4934 = vmatpush3.msra.mxu0 %v4279_v59  ;;  %4949 = vmatpush3.msra.mxu1 %v3815_v47  ;;  %v4297_v59 = vld [vmem:[%s6012_s5 + $0xa0] sm:$0xff]  ;;  %v4054_v47 = vld [vmem:[%s6014_s7 + $0x38] sm:$0xff] }
 0xcb7   :  { %4935 = vmatprep.subr.mxu0 %v4278_v61  ;;  %4950 = vmatprep.subr.mxu1 %v3814_v48 }
 0xcb8   :  { %4936 = vmatpush3.msra.mxu0 %v4278_v61  ;;  %4951 = vmatpush3.msra.mxu1 %v3814_v48  ;;  %v4053_v48 = vld [vmem:[%s6014_s7 + $0x30] sm:$0xff] }
 0xcb9   :  { %4937 = vmatprep.subr.mxu0 %v4277_v62  ;;  %4952 = vmatprep.subr.mxu1 %v3813_v49 }
 0xcba   :  { %4938 = vmatpush3.msra.mxu0 %v4277_v62  ;;  %4953 = vmatpush3.msra.mxu1 %v3813_v49  ;;  %v4052_v49 = vld [vmem:[%s6014_s7 + $0x28] sm:$0xff] }
 0xcbb   :  { %4954 = vmatprep.subr.mxu1 %v3812_v50  ;;  %4961 = vmatprep.subr.mxu0 %v4308_v52 }
 0xcbc   :  { %4955 = vmatpush3.msra.mxu1 %v3812_v50  ;;  %v4051_v50 = vld [vmem:[%s6014_s7 + $0x20] sm:$0xff] }
 0xcbd   :  { %4956 = vmatprep.subr.mxu1 %v3811_v51 }
 0xcbe   :  { %4957 = vmatpush3.msra.mxu1 %v3811_v51  ;;  %v4050_v51 = vld [vmem:[%s6014_s7 + $0x18] sm:$0xff] }
 0xcbf   :  { %4996 = vmatprep.subr.mxu1 %v5153_v41 }
 0xd5a   :  { %v3152_v63 = vpop.f32.mrf.mxu0 }
 0xd5c   :  { %v4887_v0 = vpop.f32.mrf.mxu0 }
 0xd5e   :  { %v3225_v54 = vpop.f32.mrf.mxu1 }
 0xd60   :  { %v4892_v1 = vpop.f32.mrf.mxu1 }
 0xd62   :  { %v3298_v2 = vpop.f32.mrf.mxu0 }
 0xd63   :  { %v3667_v6 = vadd.f32 %v3298_v2, %v3152_v63 }
 0xd64   :  { %v4897_v3 = vpop.f32.mrf.mxu0 }
 0xd65   :  { %v4288_v3 = vld [vmem:[%s6013_s6 + $0xe] ss:$0 sm:$0xff] }
 0xd66   :  { %v3444_v4 = vpop.f32.mrf.mxu0 }
 0xd67   :  { %v3371_v7 = vpop.f32.mrf.mxu1  ;;  %v3669_v10 = vadd.f32 %v3667_v6, %v3444_v4 }
 0xd68   :  { %v4907_v9 = vpop.f32.mrf.mxu0  ;;  %v3668_v17 = vadd.f32 %v3371_v7, %v3225_v54 }
 0xd69   :  { %v4902_v12 = vpop.f32.mrf.mxu1 }
 0xd6a   :  { %v3590_v14 = vpop.f32.mrf.mxu0 }
 0xd6b   :  { %v3517_v15 = vpop.f32.mrf.mxu1  ;;  %v3671_v16 = vadd.f32 %v3669_v10, %v3590_v14  ;;  %v4289_v10 = vld [vmem:[%s6013_s6 + $0xf] ss:$0 sm:$0xff] }
 0xd6c   :  { %v4917_v55 = vpop.f32.mrf.mxu0  ;;  %v3670_v19 = vadd.f32 %v3668_v17, %v3517_v15  ;;  %v4295_v17 = vld [vmem:[%s6012_s5 + $0x90] sm:$0xff] }
 0xd6d   :  { %v4912_v18 = vpop.f32.mrf.mxu1  ;;  %4939 = vmatprep.mubr.msk.f32.mxu0 %vm184_vm2, %v3671_v16  ;;  %v4296_v16 = vld [vmem:[%s6012_s5 + $0x98] sm:$0xff]  ;;  %v4294_v55 = vld [vmem:[%s6012_s5 + $0x88] sm:$0xff] }
 0xd6e   :  { %v4293_v18 = vld [vmem:[%s6012_s5 + $0x80] sm:$0xff] }
 0xd6f   :  { %v3663_v20 = vpop.f32.mrf.mxu1 }
 0xd70   :  { %v3672_v21 = vadd.f32 %v3670_v19, %v3663_v20  ;;  %v4290_v19 = vld [vmem:[%s6013_s6 + $0x10] ss:$0 sm:$0xff] }
 0xd71   :  { %v4922_v22 = vpop.f32.mrf.mxu1 }
 0xd72   :  { %4940 = vmatmul.mubr.msk.f32.vlgmr.msra.gmra.mxu0 %vm184_vm2, %v3672_v21 }
 0xd73   :  { %4962 = vmatpush3.msra.mxu0 %v4308_v52  ;;  %v4049_v52 = vld [vmem:[%s6014_s7 + $0x10] sm:$0xff] }
 0xd74   :  { %4963 = vmatprep.subr.mxu0 %v4307_v53 }
 0xd75   :  { %4964 = vmatpush3.msra.mxu0 %v4307_v53  ;;  %v4048_v53 = vld [vmem:[%s6014_s7 + $0x8] sm:$0xff] }
 0xd76   :  { %4965 = vmatprep.subr.mxu0 %v4306_v60 }
 0xd77   :  { %4966 = vmatpush3.msra.mxu0 %v4306_v60  ;;  %v4047_v60 = vld [vmem:[%s6014_s7] sm:$0xff] }
 0xd78   :  { %4967 = vmatprep.subr.mxu0 %v4305_v8 }
 0xd79   :  { %4968 = vmatpush3.msra.mxu0 %v4305_v8 }
 0xd7a   :  { %4969 = vmatprep.subr.mxu0 %v4304_v56 }
 0xd7b   :  { %4970 = vmatpush3.msra.mxu0 %v4304_v56 }
 0xd7c   :  { %4971 = vmatprep.subr.mxu0 %v4303_v42 }
 0xd7d   :  { %4972 = vmatpush3.msra.mxu0 %v4303_v42 }
 0xd7e   :  { %4973 = vmatprep.subr.mxu0 %v4302_v43 }
 0xd7f   :  { %4974 = vmatpush3.msra.mxu0 %v4302_v43 }
 0xd80   :  { %4975 = vmatprep.subr.mxu0 %v4301_v11 }
 0xd81   :  { %4976 = vmatpush3.msra.mxu0 %v4301_v11 }
 0xd82   :  { %4977 = vmatprep.subr.mxu0 %v4300_v13 }
 0xd83   :  { %4978 = vmatpush3.msra.mxu0 %v4300_v13 }
 0xd84   :  { %4979 = vmatprep.subr.mxu0 %v4299_v57 }
 0xd85   :  { %4980 = vmatpush3.msra.mxu0 %v4299_v57 }
 0xd86   :  { %4981 = vmatprep.subr.mxu0 %v4298_v58 }
 0xd87   :  { %4982 = vmatpush3.msra.mxu0 %v4298_v58  ;;  %v4310_v58 = vld [vmem:[%s6013_s6 + $0x12] ss:$0 sm:$0xff] }
 0xd88   :  { %4983 = vmatprep.subr.mxu0 %v4297_v59 }
 0xd89   :  { %4984 = vmatpush3.msra.mxu0 %v4297_v59 }
 0xd8a   :  { %4985 = vmatprep.subr.mxu0 %v4296_v16 }
 0xd8b   :  { %4986 = vmatpush3.msra.mxu0 %v4296_v16 }
 0xd8c   :  { %4987 = vmatprep.subr.mxu0 %v4295_v17 }
 0xd8d   :  { %4988 = vmatpush3.msra.mxu0 %v4295_v17 }
 0xd8e   :  { %4989 = vmatprep.subr.mxu0 %v4294_v55 }
 0xd8f   :  { %4990 = vmatpush3.msra.mxu0 %v4294_v55 }
 0xd90   :  { %4991 = vmatprep.subr.mxu0 %v4293_v18 }
 0xd91   :  { %4992 = vmatpush3.msra.mxu0 %v4293_v18 }
 0xe32   :  { %v4941_v24 = vpop.f32.mrf.mxu0 }
 0xe33   :  { %v3765_v25 = vadd.f32 %v4941_v24, %v4285_v23 }
 0xe34   :  { %v3759_v26 = vpop.f32.mrf.mxu0 }
 0xe35   :  { %v3760_v27 = vadd.f32 %v4285_v23, %v3759_v26  ;;  %v3769_v28 = vadd.f32 %v3765_v25, %v5686_v35  ;;  %v4309_v26 = vld [vmem:[%s6013_s6 + $0x11] ss:$0 sm:$0xff] }
 0xe37   :  { %v3775_v29 = vsel %vm184_vm2, %v3769_v28, 0.0  ;;  %v3768_v30 = vadd.f32 %v3760_v27, %v5684_v34 }
 0xe38   :  { %3776 = vadd.xlane.f32.xlu0 %v3775_v29 }
 0xe39   :  { %v3772_v31 = vsel %vm184_vm2, %v3768_v30, 0.0 }
 0xe3a   :  { %3773 = vadd.xlane.f32.xlu1 %v3772_v31 }
 0xec1   :  { %v3777_v32 = vpop.xlane.xlu0 %3776 }
 0xec2   :  { %v3779_v33 = vmul.f32 0.015625, %v3777_v32 }
 0xec3   :  { %v3774_v36 = vpop.xlane.xlu1 %3773 }
 0xec4   :  { %v5882_v37 = vsub.f32 %v3769_v28, %v3779_v33  ;;  %v3778_v38 = vmul.f32 0.015625, %v3774_v36 }
 0xec6   :  { %v5884_v39 = vsub.f32 %v3768_v30, %v3778_v38  ;;  %v3783_v40 = vmul.f32 %v5882_v37, %v5882_v37 }
 0xec8   :  { %v3787_v35 = vsel %vm184_vm2, %v3783_v40, 0.0  ;;  %v3782_v34 = vmul.f32 %v5884_v39, %v5884_v39 }
 0xec9   :  { %3788 = vadd.xlane.f32.xlu0 %v3787_v35 }
 0xeca   :  { %v3784_v44 = vsel %vm184_vm2, %v3782_v34, 0.0 }
 0xecb   :  { %3785 = vadd.xlane.f32.xlu1 %v3784_v44 }
 0xf52   :  { %v3789_v61 = vpop.xlane.xlu0 %3788 }
 0xf53   :  { %v3791_v62 = vmul.f32 0.015625, %v3789_v61 }
 0xf54   :  { %v3786_v63 = vpop.xlane.xlu1 %3785 }
 0xf55   :  { %v3793_v0 = vadd.f32 1e-05, %v3791_v62  ;;  %v3790_v54 = vmul.f32 0.015625, %v3786_v63 }
 0xf57   :  { %5096 = vrsqrt.f32 %v3793_v0  ;;  %v3792_v1 = vadd.f32 1e-05, %v3790_v54 }
 0xf59   :  { %5098 = vrsqrt.f32 %v3792_v1 }
 0xf64   :  { %v5097_v2 = vpop.eup %5096 }
 0xf65   :  { %v3797_v4 = vmul.f32 %v5097_v2, %v5882_v37 }
 0xf66   :  { %v5099_v6 = vpop.eup %5098 }
 0xf67   :  { %v3796_v7 = vmul.f32 %v5099_v6, %v5884_v39  ;;  %v3803_v9 = vmul.f32 %v4288_v3, %v3797_v4  ;;  %v4312_v4 = vld [vmem:[%s6013_s6 + $0x14] ss:$0 sm:$0xff] }
 0xf69   :  { %v3802_v12 = vmul.f32 %v4288_v3, %v3796_v7  ;;  %v3809_v15 = vadd.f32 %v4289_v10, %v3803_v9 }
 0xf6b   :  { %v3808_v14 = vadd.f32 %v4289_v10, %v3802_v12 }
 0xf6d   :  { %4958 = vmatprep.mubr.msk.f32.mxu1 %vm184_vm2, %v3808_v14 }
 0xf6e   :  { %4959 = vmatmul.mubr.msk.f32.vlgmr.msra.gmra.mxu1 %vm184_vm2, %v3809_v15 }
 0xf6f   :  { %5012 = vmatprep.mubr.msk.f32.mxu1 %vm5154_vm3, %v5153_v41  ;;  %4997 = vmatpush3.msra.mxu1 %v4054_v47 }
 0xf70   :  { %4998 = vmatprep.subr.mxu1 %v5153_v41 }
 0xf71   :  { %4999 = vmatpush3.msra.mxu1 %v4053_v48 }
 0xf72   :  { %5000 = vmatprep.subr.mxu1 %v5153_v41 }
 0xf73   :  { %5001 = vmatpush3.msra.mxu1 %v4052_v49 }
 0xf74   :  { %5002 = vmatprep.subr.mxu1 %v5153_v41 }
 0xf75   :  { %5003 = vmatpush3.msra.mxu1 %v4051_v50 }
 0xf76   :  { %5004 = vmatprep.subr.mxu1 %v5153_v41 }
 0xf77   :  { %5005 = vmatpush3.msra.mxu1 %v4050_v51 }
 0xf78   :  { %5006 = vmatprep.subr.mxu1 %v5153_v41 }
 0xf79   :  { %5007 = vmatpush3.msra.mxu1 %v4049_v52 }
 0xf7a   :  { %5008 = vmatprep.subr.mxu1 %v5153_v41 }
 0xf7b   :  { %5009 = vmatpush3.msra.mxu1 %v4048_v53 }
 0xf7c   :  { %5010 = vmatprep.subr.mxu1 %v5153_v41  ;;  %v4311_v41 = vld [vmem:[%s6013_s6 + $0x13] ss:$0 sm:$0xff] }
 0xf7d   :  { %5011 = vmatpush3.msra.mxu1 %v4047_v60 }
0x102e   :  { %v4960_v20 = vpop.f32.mrf.mxu1 }
0x102f   :  { %v3902_v21 = vadd.f32 %v4960_v20, %v4290_v19 }
0x1030   :  { %v3896_v22 = vpop.f32.mrf.mxu1 }
0x1031   :  { %v3897_v23 = vadd.f32 %v4290_v19, %v3896_v22  ;;  %v3906_v25 = vmax.f32 %v3902_v21, 0.0 }
0x1033   :  { %v3905_v24 = vmax.f32 %v3897_v23, 0.0 }
0x1035   :  { %4993 = vmatprep.mubr.f32.mxu0 %v3905_v24 }
0x1036   :  { %4994 = vmatmul.mubr.f32.vlgmr.msra.gmra.mxu0 %v3906_v25 }
0x10f6   :  { %v4995_v27 = vpop.f32.mrf.mxu0 }
0x10f7   :  { %v4001_v28 = vadd.f32 %v4995_v27, %v4309_v26 }
0x10f8   :  { %v3995_v29 = vpop.f32.mrf.mxu0 }
0x10f9   :  { %v3996_v30 = vadd.f32 %v4309_v26, %v3995_v29  ;;  %v4005_v31 = vadd.f32 %v4001_v28, %v3809_v15 }
0x10fb   :  { %v4011_v32 = vsel %vm184_vm2, %v4005_v31, 0.0  ;;  %v4004_v33 = vadd.f32 %v3996_v30, %v3808_v14 }
0x10fc   :  { %4012 = vadd.xlane.f32.xlu1 %v4011_v32 }
0x10fd   :  { %v4008_v36 = vsel %vm184_vm2, %v4004_v33, 0.0 }
0x10fe   :  { %4009 = vadd.xlane.f32.xlu0 %v4008_v36 }
0x1185   :  { %v4013_v37 = vpop.xlane.xlu1 %4012 }
0x1186   :  { %v4015_v38 = vmul.f32 0.015625, %v4013_v37 }
0x1187   :  { %v4010_v39 = vpop.xlane.xlu0 %4009 }
0x1188   :  { %v4017_v40 = vsub.f32 %v4005_v31, %v4015_v38  ;;  %v4014_v35 = vmul.f32 0.015625, %v4010_v39 }
0x118a   :  { %v4016_v34 = vsub.f32 %v4004_v33, %v4014_v35  ;;  %v4019_v44 = vmul.f32 %v4017_v40, %v4017_v40 }
0x118c   :  { %v4023_v45 = vsel %vm184_vm2, %v4019_v44, 0.0  ;;  %v4018_v46 = vmul.f32 %v4016_v34, %v4016_v34 }
0x118d   :  { %4024 = vadd.xlane.f32.xlu1 %v4023_v45 }
0x118e   :  { %v4020_v5 = vsel %vm184_vm2, %v4018_v46, 0.0 }
0x118f   :  { %4021 = vadd.xlane.f32.xlu0 %v4020_v5 }
0x1216   :  { %v4025_v8 = vpop.xlane.xlu1 %4024 }
0x1217   :  { %v4027_v56 = vmul.f32 0.015625, %v4025_v8 }
0x1218   :  { %v4022_v42 = vpop.xlane.xlu0 %4021 }
0x1219   :  { %v4029_v43 = vadd.f32 1e-05, %v4027_v56  ;;  %v4026_v11 = vmul.f32 0.015625, %v4022_v42 }
0x121b   :  { %5100 = vrsqrt.f32 %v4029_v43  ;;  %v4028_v13 = vadd.f32 1e-05, %v4026_v11 }
0x121d   :  { %5102 = vrsqrt.f32 %v4028_v13 }
0x1228   :  { %v5101_v57 = vpop.eup %5100 }
0x1229   :  { %v4033_v59 = vmul.f32 %v5101_v57, %v4017_v40 }
0x122a   :  { %v5103_v61 = vpop.eup %5102 }
0x122b   :  { %v4032_v62 = vmul.f32 %v5103_v61, %v4016_v34  ;;  %v4039_v63 = vmul.f32 %v4310_v58, %v4033_v59 }
0x122d   :  { %v4038_v0 = vmul.f32 %v4310_v58, %v4032_v62  ;;  %v4045_v54 = vadd.f32 %v4311_v41, %v4039_v63 }
0x122f   :  { %v4044_v1 = vadd.f32 %v4311_v41, %v4038_v0  ;;  %v4061_v2 = vrot.slane %v4045_v54, 7 }
0x1231   :  { %v4063_v3 = vsel %vm4062_vm15, %v4061_v2, %v4044_v1 }
0x1232   :  { %5013 = vmatmul.mubr.msk.f32.vlgmr.msra.gmra.mxu1 %vm184_vm2, %v4063_v3 }
0x12f2   :  { %v4132_v6 = vpop.f32.mrf.mxu1 }
0x12f3   :  { %v4133_v7 = vadd.f32 %v4312_v4, %v4132_v6 }
0x12f4   :  { %v5014_v9 = vpop.f32.mrf.mxu1 }
0x12f5   :  { %4136 = vst [vmem:[#allocation5] sm:$0x3] %v4133_v7 }
0x12f6   :  { %5135 = shalt.err (!%p5132_p9)
}
0x12f7   :  { %4146 = dma.vmem_to_hbm [thread:$0]  %s4144_s16, 32, %s6015_s8, [#allocation4]  }
0x12f8   :  { %5146 = dma.done.wait [#allocation4], 32  }
0x12f9   :  { %5147 = vsyncadd [#allocation4], 4294967264 }
0x12fa   :  { %4150 = vsyncpa [#allocation3], 1 }
0x12fb   :  { %4151 = vsyncpa [#allocation4], 1 }

</bundles_post_ra>
